<compile_context>
chip_gen: v7x
topology: tpu7x:2x2x1
jax: 0.10.0
libtpu: 0.0.40
codegen_flags: <defaults>
</compile_context>

<pallas_src>
import functools

import jax
import jax.numpy as jnp
from jax import lax
from jax.experimental import pallas as pl
from jax.experimental.pallas import tpu as pltpu

# ~2 MiB per block; with double-buffered input + output this is ~8 MiB of VMEM,
# safe on v5e (16 MiB scoped default), v6e (32 MiB) and v7x (32 MiB / 64 MiB).
_TARGET_TILE_BYTES = 2 * 1024 * 1024

# Hash / stream constants (lowbias32-style mixing).
_GOLD = 0x9E3779B9
_STREAM = 0x85EBCA6B
_HASH_M1 = 0x7FEB352D
_HASH_M2 = 0x846CA68B


# ------------------------- in-kernel stateless PRNG -------------------------


def _elem_index(tile_rows, lanes, shape):
    """Global element index (uint32) for every element of the current block."""
    row0 = pl.program_id(0) * tile_rows
    r = lax.broadcasted_iota(jnp.int32, shape, 0)
    c = lax.broadcasted_iota(jnp.int32, shape, 1)
    return ((row0 + r) * lanes + c).astype(jnp.uint32)


def _random_bits(idx_u32, seed_u32, stream):
    """One independent 32-bit draw per (element index, seed, stream)."""
    x = (idx_u32
         + seed_u32 * jnp.uint32(_GOLD)
         + jnp.uint32((stream * _STREAM) & 0xFFFFFFFF))
    x = (x ^ (x >> jnp.uint32(16))) * jnp.uint32(_HASH_M1)
    x = (x ^ (x >> jnp.uint32(15))) * jnp.uint32(_HASH_M2)
    x = x ^ (x >> jnp.uint32(16))
    return x


def _uniform01(bits_u32):
    """uint32 bits -> float32 uniform in [0, 1)."""
    return (bits_u32 >> jnp.uint32(8)).astype(jnp.float32) * jnp.float32(
        1.0 / (1 << 24))


def _std_normal(idx_u32, seed_u32):
    """Approximate N(0,1): Irwin-Hall sum of 12 uniforms (two 16-bit uniforms
    per 32-bit draw -> only 6 hash evaluations per element)."""
    inv16 = jnp.float32(1.0 / 65536.0)
    total = None
    for k in range(6):
        bits = _random_bits(idx_u32, seed_u32, k)
        lo = (bits & jnp.uint32(0xFFFF)).astype(jnp.float32)
        hi = (bits >> jnp.uint32(16)).astype(jnp.float32)
        s = (lo + hi) * inv16
        total = s if total is None else total + s
    return total - jnp.float32(6.0)


# --------------------------------- kernels ----------------------------------


def _gaussian_kernel(tile_rows, lanes, seed_ref, scalar_ref, x_ref, o_ref):
    # noise = randn_like(x) * noise_std ; out = clamp(x + noise, 0, 1)
    idx = _elem_index(tile_rows, lanes, x_ref.shape)
    seed = seed_ref[0].astype(jnp.uint32)
    z = _std_normal(idx, seed)
    x = x_ref[...].astype(jnp.float32)
    out = jnp.clip(x + z * scalar_ref[0], 0.0, 1.0)
    o_ref[...] = out.astype(o_ref.dtype)


def _dropout_kernel(tile_rows, lanes, seed_ref, scalar_ref, x_ref, o_ref):
    # mask = rand_like(x) > dropout_prob ; out = x * mask
    # NOTE: no 1/(1-p) rescale — matches the PyTorch reference exactly.
    idx = _elem_index(tile_rows, lanes, x_ref.shape)
    seed = seed_ref[0].astype(jnp.uint32)
    u = _uniform01(_random_bits(idx, seed, 0))
    keep = (u > scalar_ref[0]).astype(jnp.float32)
    o_ref[...] = (x_ref[...].astype(jnp.float32) * keep).astype(o_ref.dtype)


def _salt_pepper_kernel(tile_rows, lanes, seed_ref, scalar_ref, x_ref, o_ref):
    # One 32-bit draw per element, split into two 16-bit uniforms (salt/pepper).
    # Pepper applied after salt, matching the in-place PyTorch order.
    idx = _elem_index(tile_rows, lanes, x_ref.shape)
    seed = seed_ref[0].astype(jnp.uint32)
    bits = _random_bits(idx, seed, 0)
    inv16 = jnp.float32(1.0 / 65536.0)
    u_salt = (bits & jnp.uint32(0xFFFF)).astype(jnp.float32) * inv16
    u_pepper = (bits >> jnp.uint32(16)).astype(jnp.float32) * inv16
    thr = scalar_ref[0] * jnp.float32(0.5)
    x = x_ref[...].astype(jnp.float32)
    r = jnp.where(u_salt < thr, jnp.float32(1.0), x)
    r = jnp.where(u_pepper < thr, jnp.float32(0.0), r)
    o_ref[...] = r.astype(o_ref.dtype)


_KERNELS = {
    "gaussian": _gaussian_kernel,
    "dropout": _dropout_kernel,
    "salt_pepper": _salt_pepper_kernel,
}


# ----------------------------- pallas_call wrapper ---------------------------


def _run_pallas(x2d, seed, scalar, noise_type, tile_rows):
    rows, lanes = x2d.shape
    kernel = functools.partial(_KERNELS[noise_type], tile_rows, lanes)
    grid = (pl.cdiv(rows, tile_rows),)
    return pl.pallas_call(
        kernel,
        out_shape=jax.ShapeDtypeStruct((rows, lanes), x2d.dtype),
        grid_spec=pltpu.PrefetchScalarGridSpec(
            num_scalar_prefetch=0,
            grid=grid,
            in_specs=[
                pl.BlockSpec(memory_space=pltpu.MemorySpace.SMEM),  # seed (1,) i32
                pl.BlockSpec(memory_space=pltpu.MemorySpace.SMEM),  # scalar (1,) f32
                pl.BlockSpec((tile_rows, lanes), lambda i: (i, 0)),
            ],
            out_specs=pl.BlockSpec((tile_rows, lanes), lambda i: (i, 0)),
        ),
        # Elementwise, matching shape/dtype: allow in-place reuse of the input
        # HBM buffer (a real win when the activation buffer is donatable).
        input_output_aliases={2: 0},
        compiler_params=pltpu.CompilerParams(
            dimension_semantics=("parallel",)),
    )(
        seed.reshape(1).astype(jnp.int32),
        scalar.reshape(1).astype(jnp.float32),
        x2d,
    )


@functools.partial(jax.jit, static_argnames=("noise_type", "noise_prob"))
def _noise_forward(x, gate, mag, seed, *, noise_type, noise_prob):
    coef = {"gaussian": 0.1, "dropout": 0.2, "salt_pepper": 0.1}[noise_type]
    scalar = (mag * coef).astype(jnp.float32)

    n = x.size
    itemsize = jnp.dtype(x.dtype).itemsize

    # Lane-dense slab: pick the widest lane count that divides n (no pad pass
    # in the common case); fall back to 128 lanes + pad for odd sizes.
    lane = 128
    for cand in (1024, 512, 256):
        if n % cand == 0:
            lane = cand
            break
    pad = (-n) % lane
    rows = (n + pad) // lane

    # ~2 MiB row tiles (multiple of 8 rows), or the full row extent when small.
    max_rows = max(8, (_TARGET_TILE_BYTES // (lane * itemsize)) // 8 * 8)
    tile_rows = rows if rows <= max_rows else max_rows

    def _apply(xv):
        flat = xv.reshape(-1)
        if pad:
            # TODO(synk): rare fallback (numel not a multiple of 128); costs an
            # extra HBM pass for pad + unpad.
            flat = jnp.pad(flat, (0, pad))
        out2d = _run_pallas(flat.reshape(rows, lane), seed, scalar,
                            noise_type, tile_rows)
        out = out2d.reshape(-1)
        if pad:
            out = out[:n]
        return out.reshape(xv.shape)

    # Stochastic gate stays on device (no host sync): apply when gate <= prob.
    return lax.cond(gate <= jnp.float32(noise_prob), _apply, lambda v: v, x)


# ------------------------------ module wrapper -------------------------------


class NoiseAugmentationLayer:
    """JAX/Pallas port of the PyTorch NoiseAugmentationLayer."""

    def __init__(self, noise_type: str = "gaussian", noise_prob: float = 0.5):
        self.noise_type = noise_type
        self.noise_prob = noise_prob

    def __call__(self, x, key, training: bool = True):
        if not training:
            return x
        if self.noise_type not in _KERNELS:
            return x
        k_gate, k_mag, k_seed = jax.random.split(key, 3)
        gate = jax.random.uniform(k_gate, (), jnp.float32)     # torch.rand(1)
        mag = jax.random.uniform(k_mag, (), jnp.float32)       # torch.rand(1)
        seed = jax.random.randint(k_seed, (), 0, jnp.iinfo(jnp.int32).max,
                                  dtype=jnp.int32)
        return _noise_forward(x, gate, mag, seed,
                              noise_type=self.noise_type,
                              noise_prob=float(self.noise_prob))


# ---------------------------------- demo -------------------------------------

if __name__ == "__main__":
    key = jax.random.PRNGKey(0)
    k_x, k_call = jax.random.split(key)

    # NCHW input in [0, 1] (image-like), small shapes.
    x = jax.random.uniform(k_x, (2, 4, 16, 16), dtype=jnp.float32)

    # noise_prob=1.0 so the stochastic gate always fires and the kernel runs.
    for ntype in ("gaussian", "dropout", "salt_pepper"):
        layer = NoiseAugmentationLayer(noise_type=ntype, noise_prob=1.0)
        y = jax.block_until_ready(layer(x, k_call, training=True))
        assert y.shape == x.shape and y.dtype == x.dtype
        assert bool(jnp.all(jnp.isfinite(y)))
        if ntype == "gaussian":
            # clamp(., 0, 1) semantics
            assert float(jnp.min(y)) >= 0.0 and float(jnp.max(y)) <= 1.0

    # Eval mode returns the input unchanged.
    layer_eval = NoiseAugmentationLayer(noise_type="gaussian", noise_prob=1.0)
    y_eval = jax.block_until_ready(layer_eval(x, k_call, training=False))
    assert bool(jnp.all(y_eval == x))

    print("KERNEL_OK")
</pallas_src>

<mosaic_0001>
module attributes {stable_mosaic.version = 11 : i64} {
  func.func @_gaussian_kernel(%arg0: i32, %arg1: memref<1xi32, #tpu.memory_space<smem>>, %arg2: memref<1xf32, #tpu.memory_space<smem>>, %arg3: memref<2x1024xf32, #tpu.memory_space<vmem>>, %arg4: memref<2x1024xf32, #tpu.memory_space<vmem>>) attributes {dimension_semantics = [#tpu.dimension_semantics<parallel>], iteration_bounds = array<i64: 1>, scalar_prefetch = 0 : i64, scratch_operands = 0 : i64, tpu.core_type = #tpu.core_type<tc>, window_params = [{transform_indices = @transform_0, window_bounds = array<i64: 1>}, {transform_indices = @transform_1, window_bounds = array<i64: 1>}, {transform_indices = @transform_2, window_bounds = array<i64: 2, 1024>}, {transform_indices = @transform_3, window_bounds = array<i64: 2, 1024>}]} {
    %c2_i32 = arith.constant 2 : i32
    %0 = arith.muli %arg0, %c2_i32 : i32
    %1 = tpu.iota {dimensions = array<i32: 0>} : vector<2x1024xi32>
    %2 = tpu.iota {dimensions = array<i32: 1>} : vector<2x1024xi32>
    %3 = vector.broadcast %0 : i32 to vector<2x1024xi32>
    %4 = arith.addi %3, %1 : vector<2x1024xi32>
    %c1024_i32 = arith.constant 1024 : i32
    %5 = vector.broadcast %c1024_i32 : i32 to vector<2x1024xi32>
    %6 = arith.muli %4, %5 : vector<2x1024xi32>
    %7 = arith.addi %6, %2 : vector<2x1024xi32>
    %c0 = arith.constant 0 : index
    %8 = memref.load %arg1[%c0] : memref<1xi32, #tpu.memory_space<smem>>
    %c-1640531527_i32 = arith.constant -1640531527 : i32
    %9 = arith.muli %8, %c-1640531527_i32 : i32
    %10 = vector.broadcast %9 : i32 to vector<2x1024xi32>
    %11 = arith.addi %7, %10 : vector<2x1024xi32>
    %c0_i32 = arith.constant 0 : i32
    %12 = vector.broadcast %c0_i32 : i32 to vector<2x1024xi32>
    %13 = arith.addi %11, %12 : vector<2x1024xi32>
    %c16_i32 = arith.constant 16 : i32
    %14 = vector.broadcast %c16_i32 : i32 to vector<2x1024xi32>
    %15 = arith.shrui %13, %14 : vector<2x1024xi32>
    %16 = arith.xori %13, %15 : vector<2x1024xi32>
    %c2146121005_i32 = arith.constant 2146121005 : i32
    %17 = vector.broadcast %c2146121005_i32 : i32 to vector<2x1024xi32>
    %18 = arith.muli %16, %17 : vector<2x1024xi32>
    %c15_i32 = arith.constant 15 : i32
    %19 = vector.broadcast %c15_i32 : i32 to vector<2x1024xi32>
    %20 = arith.shrui %18, %19 : vector<2x1024xi32>
    %21 = arith.xori %18, %20 : vector<2x1024xi32>
    %c-2073254261_i32 = arith.constant -2073254261 : i32
    %22 = vector.broadcast %c-2073254261_i32 : i32 to vector<2x1024xi32>
    %23 = arith.muli %21, %22 : vector<2x1024xi32>
    %c16_i32_0 = arith.constant 16 : i32
    %24 = vector.broadcast %c16_i32_0 : i32 to vector<2x1024xi32>
    %25 = arith.shrui %23, %24 : vector<2x1024xi32>
    %26 = arith.xori %23, %25 : vector<2x1024xi32>
    %c65535_i32 = arith.constant 65535 : i32
    %27 = vector.broadcast %c65535_i32 : i32 to vector<2x1024xi32>
    %28 = arith.andi %26, %27 : vector<2x1024xi32>
    %29 = arith.uitofp %28 : vector<2x1024xi32> to vector<2x1024xf32>
    %c16_i32_1 = arith.constant 16 : i32
    %30 = vector.broadcast %c16_i32_1 : i32 to vector<2x1024xi32>
    %31 = arith.shrui %26, %30 : vector<2x1024xi32>
    %32 = arith.uitofp %31 : vector<2x1024xi32> to vector<2x1024xf32>
    %33 = arith.addf %29, %32 : vector<2x1024xf32>
    %cst = arith.constant 1.52587891E-5 : f32
    %34 = vector.broadcast %cst : f32 to vector<2x1024xf32>
    %35 = arith.mulf %33, %34 : vector<2x1024xf32>
    %c-1640531527_i32_2 = arith.constant -1640531527 : i32
    %36 = arith.muli %8, %c-1640531527_i32_2 : i32
    %37 = vector.broadcast %36 : i32 to vector<2x1024xi32>
    %38 = arith.addi %7, %37 : vector<2x1024xi32>
    %c-2048144789_i32 = arith.constant -2048144789 : i32
    %39 = vector.broadcast %c-2048144789_i32 : i32 to vector<2x1024xi32>
    %40 = arith.addi %38, %39 : vector<2x1024xi32>
    %c16_i32_3 = arith.constant 16 : i32
    %41 = vector.broadcast %c16_i32_3 : i32 to vector<2x1024xi32>
    %42 = arith.shrui %40, %41 : vector<2x1024xi32>
    %43 = arith.xori %40, %42 : vector<2x1024xi32>
    %c2146121005_i32_4 = arith.constant 2146121005 : i32
    %44 = vector.broadcast %c2146121005_i32_4 : i32 to vector<2x1024xi32>
    %45 = arith.muli %43, %44 : vector<2x1024xi32>
    %c15_i32_5 = arith.constant 15 : i32
    %46 = vector.broadcast %c15_i32_5 : i32 to vector<2x1024xi32>
    %47 = arith.shrui %45, %46 : vector<2x1024xi32>
    %48 = arith.xori %45, %47 : vector<2x1024xi32>
    %c-2073254261_i32_6 = arith.constant -2073254261 : i32
    %49 = vector.broadcast %c-2073254261_i32_6 : i32 to vector<2x1024xi32>
    %50 = arith.muli %48, %49 : vector<2x1024xi32>
    %c16_i32_7 = arith.constant 16 : i32
    %51 = vector.broadcast %c16_i32_7 : i32 to vector<2x1024xi32>
    %52 = arith.shrui %50, %51 : vector<2x1024xi32>
    %53 = arith.xori %50, %52 : vector<2x1024xi32>
    %c65535_i32_8 = arith.constant 65535 : i32
    %54 = vector.broadcast %c65535_i32_8 : i32 to vector<2x1024xi32>
    %55 = arith.andi %53, %54 : vector<2x1024xi32>
    %56 = arith.uitofp %55 : vector<2x1024xi32> to vector<2x1024xf32>
    %c16_i32_9 = arith.constant 16 : i32
    %57 = vector.broadcast %c16_i32_9 : i32 to vector<2x1024xi32>
    %58 = arith.shrui %53, %57 : vector<2x1024xi32>
    %59 = arith.uitofp %58 : vector<2x1024xi32> to vector<2x1024xf32>
    %60 = arith.addf %56, %59 : vector<2x1024xf32>
    %cst_10 = arith.constant 1.52587891E-5 : f32
    %61 = vector.broadcast %cst_10 : f32 to vector<2x1024xf32>
    %62 = arith.mulf %60, %61 : vector<2x1024xf32>
    %63 = arith.addf %35, %62 : vector<2x1024xf32>
    %c-1640531527_i32_11 = arith.constant -1640531527 : i32
    %64 = arith.muli %8, %c-1640531527_i32_11 : i32
    %65 = vector.broadcast %64 : i32 to vector<2x1024xi32>
    %66 = arith.addi %7, %65 : vector<2x1024xi32>
    %c198677718_i32 = arith.constant 198677718 : i32
    %67 = vector.broadcast %c198677718_i32 : i32 to vector<2x1024xi32>
    %68 = arith.addi %66, %67 : vector<2x1024xi32>
    %c16_i32_12 = arith.constant 16 : i32
    %69 = vector.broadcast %c16_i32_12 : i32 to vector<2x1024xi32>
    %70 = arith.shrui %68, %69 : vector<2x1024xi32>
    %71 = arith.xori %68, %70 : vector<2x1024xi32>
    %c2146121005_i32_13 = arith.constant 2146121005 : i32
    %72 = vector.broadcast %c2146121005_i32_13 : i32 to vector<2x1024xi32>
    %73 = arith.muli %71, %72 : vector<2x1024xi32>
    %c15_i32_14 = arith.constant 15 : i32
    %74 = vector.broadcast %c15_i32_14 : i32 to vector<2x1024xi32>
    %75 = arith.shrui %73, %74 : vector<2x1024xi32>
    %76 = arith.xori %73, %75 : vector<2x1024xi32>
    %c-2073254261_i32_15 = arith.constant -2073254261 : i32
    %77 = vector.broadcast %c-2073254261_i32_15 : i32 to vector<2x1024xi32>
    %78 = arith.muli %76, %77 : vector<2x1024xi32>
    %c16_i32_16 = arith.constant 16 : i32
    %79 = vector.broadcast %c16_i32_16 : i32 to vector<2x1024xi32>
    %80 = arith.shrui %78, %79 : vector<2x1024xi32>
    %81 = arith.xori %78, %80 : vector<2x1024xi32>
    %c65535_i32_17 = arith.constant 65535 : i32
    %82 = vector.broadcast %c65535_i32_17 : i32 to vector<2x1024xi32>
    %83 = arith.andi %81, %82 : vector<2x1024xi32>
    %84 = arith.uitofp %83 : vector<2x1024xi32> to vector<2x1024xf32>
    %c16_i32_18 = arith.constant 16 : i32
    %85 = vector.broadcast %c16_i32_18 : i32 to vector<2x1024xi32>
    %86 = arith.shrui %81, %85 : vector<2x1024xi32>
    %87 = arith.uitofp %86 : vector<2x1024xi32> to vector<2x1024xf32>
    %88 = arith.addf %84, %87 : vector<2x1024xf32>
    %cst_19 = arith.constant 1.52587891E-5 : f32
    %89 = vector.broadcast %cst_19 : f32 to vector<2x1024xf32>
    %90 = arith.mulf %88, %89 : vector<2x1024xf32>
    %91 = arith.addf %63, %90 : vector<2x1024xf32>
    %c-1640531527_i32_20 = arith.constant -1640531527 : i32
    %92 = arith.muli %8, %c-1640531527_i32_20 : i32
    %93 = vector.broadcast %92 : i32 to vector<2x1024xi32>
    %94 = arith.addi %7, %93 : vector<2x1024xi32>
    %c-1849467071_i32 = arith.constant -1849467071 : i32
    %95 = vector.broadcast %c-1849467071_i32 : i32 to vector<2x1024xi32>
    %96 = arith.addi %94, %95 : vector<2x1024xi32>
    %c16_i32_21 = arith.constant 16 : i32
    %97 = vector.broadcast %c16_i32_21 : i32 to vector<2x1024xi32>
    %98 = arith.shrui %96, %97 : vector<2x1024xi32>
    %99 = arith.xori %96, %98 : vector<2x1024xi32>
    %c2146121005_i32_22 = arith.constant 2146121005 : i32
    %100 = vector.broadcast %c2146121005_i32_22 : i32 to vector<2x1024xi32>
    %101 = arith.muli %99, %100 : vector<2x1024xi32>
    %c15_i32_23 = arith.constant 15 : i32
    %102 = vector.broadcast %c15_i32_23 : i32 to vector<2x1024xi32>
    %103 = arith.shrui %101, %102 : vector<2x1024xi32>
    %104 = arith.xori %101, %103 : vector<2x1024xi32>
    %c-2073254261_i32_24 = arith.constant -2073254261 : i32
    %105 = vector.broadcast %c-2073254261_i32_24 : i32 to vector<2x1024xi32>
    %106 = arith.muli %104, %105 : vector<2x1024xi32>
    %c16_i32_25 = arith.constant 16 : i32
    %107 = vector.broadcast %c16_i32_25 : i32 to vector<2x1024xi32>
    %108 = arith.shrui %106, %107 : vector<2x1024xi32>
    %109 = arith.xori %106, %108 : vector<2x1024xi32>
    %c65535_i32_26 = arith.constant 65535 : i32
    %110 = vector.broadcast %c65535_i32_26 : i32 to vector<2x1024xi32>
    %111 = arith.andi %109, %110 : vector<2x1024xi32>
    %112 = arith.uitofp %111 : vector<2x1024xi32> to vector<2x1024xf32>
    %c16_i32_27 = arith.constant 16 : i32
    %113 = vector.broadcast %c16_i32_27 : i32 to vector<2x1024xi32>
    %114 = arith.shrui %109, %113 : vector<2x1024xi32>
    %115 = arith.uitofp %114 : vector<2x1024xi32> to vector<2x1024xf32>
    %116 = arith.addf %112, %115 : vector<2x1024xf32>
    %cst_28 = arith.constant 1.52587891E-5 : f32
    %117 = vector.broadcast %cst_28 : f32 to vector<2x1024xf32>
    %118 = arith.mulf %116, %117 : vector<2x1024xf32>
    %119 = arith.addf %91, %118 : vector<2x1024xf32>
    %c-1640531527_i32_29 = arith.constant -1640531527 : i32
    %120 = arith.muli %8, %c-1640531527_i32_29 : i32
    %121 = vector.broadcast %120 : i32 to vector<2x1024xi32>
    %122 = arith.addi %7, %121 : vector<2x1024xi32>
    %c397355436_i32 = arith.constant 397355436 : i32
    %123 = vector.broadcast %c397355436_i32 : i32 to vector<2x1024xi32>
    %124 = arith.addi %122, %123 : vector<2x1024xi32>
    %c16_i32_30 = arith.constant 16 : i32
    %125 = vector.broadcast %c16_i32_30 : i32 to vector<2x1024xi32>
    %126 = arith.shrui %124, %125 : vector<2x1024xi32>
    %127 = arith.xori %124, %126 : vector<2x1024xi32>
    %c2146121005_i32_31 = arith.constant 2146121005 : i32
    %128 = vector.broadcast %c2146121005_i32_31 : i32 to vector<2x1024xi32>
    %129 = arith.muli %127, %128 : vector<2x1024xi32>
    %c15_i32_32 = arith.constant 15 : i32
    %130 = vector.broadcast %c15_i32_32 : i32 to vector<2x1024xi32>
    %131 = arith.shrui %129, %130 : vector<2x1024xi32>
    %132 = arith.xori %129, %131 : vector<2x1024xi32>
    %c-2073254261_i32_33 = arith.constant -2073254261 : i32
    %133 = vector.broadcast %c-2073254261_i32_33 : i32 to vector<2x1024xi32>
    %134 = arith.muli %132, %133 : vector<2x1024xi32>
    %c16_i32_34 = arith.constant 16 : i32
    %135 = vector.broadcast %c16_i32_34 : i32 to vector<2x1024xi32>
    %136 = arith.shrui %134, %135 : vector<2x1024xi32>
    %137 = arith.xori %134, %136 : vector<2x1024xi32>
    %c65535_i32_35 = arith.constant 65535 : i32
    %138 = vector.broadcast %c65535_i32_35 : i32 to vector<2x1024xi32>
    %139 = arith.andi %137, %138 : vector<2x1024xi32>
    %140 = arith.uitofp %139 : vector<2x1024xi32> to vector<2x1024xf32>
    %c16_i32_36 = arith.constant 16 : i32
    %141 = vector.broadcast %c16_i32_36 : i32 to vector<2x1024xi32>
    %142 = arith.shrui %137, %141 : vector<2x1024xi32>
    %143 = arith.uitofp %142 : vector<2x1024xi32> to vector<2x1024xf32>
    %144 = arith.addf %140, %143 : vector<2x1024xf32>
    %cst_37 = arith.constant 1.52587891E-5 : f32
    %145 = vector.broadcast %cst_37 : f32 to vector<2x1024xf32>
    %146 = arith.mulf %144, %145 : vector<2x1024xf32>
    %147 = arith.addf %119, %146 : vector<2x1024xf32>
    %c-1640531527_i32_38 = arith.constant -1640531527 : i32
    %148 = arith.muli %8, %c-1640531527_i32_38 : i32
    %149 = vector.broadcast %148 : i32 to vector<2x1024xi32>
    %150 = arith.addi %7, %149 : vector<2x1024xi32>
    %c-1650789353_i32 = arith.constant -1650789353 : i32
    %151 = vector.broadcast %c-1650789353_i32 : i32 to vector<2x1024xi32>
    %152 = arith.addi %150, %151 : vector<2x1024xi32>
    %c16_i32_39 = arith.constant 16 : i32
    %153 = vector.broadcast %c16_i32_39 : i32 to vector<2x1024xi32>
    %154 = arith.shrui %152, %153 : vector<2x1024xi32>
    %155 = arith.xori %152, %154 : vector<2x1024xi32>
    %c2146121005_i32_40 = arith.constant 2146121005 : i32
    %156 = vector.broadcast %c2146121005_i32_40 : i32 to vector<2x1024xi32>
    %157 = arith.muli %155, %156 : vector<2x1024xi32>
    %c15_i32_41 = arith.constant 15 : i32
    %158 = vector.broadcast %c15_i32_41 : i32 to vector<2x1024xi32>
    %159 = arith.shrui %157, %158 : vector<2x1024xi32>
    %160 = arith.xori %157, %159 : vector<2x1024xi32>
    %c-2073254261_i32_42 = arith.constant -2073254261 : i32
    %161 = vector.broadcast %c-2073254261_i32_42 : i32 to vector<2x1024xi32>
    %162 = arith.muli %160, %161 : vector<2x1024xi32>
    %c16_i32_43 = arith.constant 16 : i32
    %163 = vector.broadcast %c16_i32_43 : i32 to vector<2x1024xi32>
    %164 = arith.shrui %162, %163 : vector<2x1024xi32>
    %165 = arith.xori %162, %164 : vector<2x1024xi32>
    %c65535_i32_44 = arith.constant 65535 : i32
    %166 = vector.broadcast %c65535_i32_44 : i32 to vector<2x1024xi32>
    %167 = arith.andi %165, %166 : vector<2x1024xi32>
    %168 = arith.uitofp %167 : vector<2x1024xi32> to vector<2x1024xf32>
    %c16_i32_45 = arith.constant 16 : i32
    %169 = vector.broadcast %c16_i32_45 : i32 to vector<2x1024xi32>
    %170 = arith.shrui %165, %169 : vector<2x1024xi32>
    %171 = arith.uitofp %170 : vector<2x1024xi32> to vector<2x1024xf32>
    %172 = arith.addf %168, %171 : vector<2x1024xf32>
    %cst_46 = arith.constant 1.52587891E-5 : f32
    %173 = vector.broadcast %cst_46 : f32 to vector<2x1024xf32>
    %174 = arith.mulf %172, %173 : vector<2x1024xf32>
    %175 = arith.addf %147, %174 : vector<2x1024xf32>
    %cst_47 = arith.constant 6.000000e+00 : f32
    %176 = vector.broadcast %cst_47 : f32 to vector<2x1024xf32>
    %177 = arith.subf %175, %176 : vector<2x1024xf32>
    %c0_48 = arith.constant 0 : index
    %c0_49 = arith.constant 0 : index
    %178 = vector.load %arg3[%c0_48, %c0_49] : memref<2x1024xf32, #tpu.memory_space<vmem>>, vector<2x1024xf32>
    %c0_50 = arith.constant 0 : index
    %179 = memref.load %arg2[%c0_50] : memref<1xf32, #tpu.memory_space<smem>>
    %180 = vector.broadcast %179 : f32 to vector<2x1024xf32>
    %181 = arith.mulf %177, %180 : vector<2x1024xf32>
    %182 = arith.addf %178, %181 : vector<2x1024xf32>
    %cst_51 = arith.constant 0.000000e+00 : f32
    %cst_52 = arith.constant 1.000000e+00 : f32
    %183 = vector.broadcast %cst_51 : f32 to vector<2x1024xf32>
    %184 = arith.maximumf %183, %182 : vector<2x1024xf32>
    %185 = vector.broadcast %cst_52 : f32 to vector<2x1024xf32>
    %186 = arith.minimumf %185, %184 : vector<2x1024xf32>
    %c0_53 = arith.constant 0 : index
    %c0_54 = arith.constant 0 : index
    %187 = vector.load %arg4[%c0_53, %c0_54] : memref<2x1024xf32, #tpu.memory_space<vmem>>, vector<2x1024xf32>
    tpu.vector_store %arg4[%c0_53, %c0_54], %186 {strides = array<i32>} : memref<2x1024xf32, #tpu.memory_space<vmem>>, vector<2x1024xf32>,
    return
  }
  func.func @transform_0(%arg0: i32) -> i32 {
    %c0_i32 = arith.constant 0 : i32
    %c0_i32_0 = arith.constant 0 : i32
    return %c0_i32 : i32
  }
  func.func @transform_1(%arg0: i32) -> i32 {
    %c0_i32 = arith.constant 0 : i32
    %c0_i32_0 = arith.constant 0 : i32
    return %c0_i32 : i32
  }
  func.func @transform_2(%arg0: i32) -> (i32, i32) {
    %c0_i32 = arith.constant 0 : i32
    %c0_i32_0 = arith.constant 0 : i32
    return %arg0, %c0_i32 : i32, i32
  }
  func.func @transform_3(%arg0: i32) -> (i32, i32) {
    %c0_i32 = arith.constant 0 : i32
    %c0_i32_0 = arith.constant 0 : i32
    return %arg0, %c0_i32 : i32, i32
  }
}

</mosaic_0001>

<bundles_post_ra>
// kernel: branch_1_fun.1
= control target key start
LH: loop header
LB: loop body
LE: loop exit
PB: predicated region body
PF: predicated region fallthrough
CT: control target
= control target key end

     0   :  { %v17_v0 = vlaneseq  ;;  %s1900_s0 = inlined_call_operand.<no memory space> [shape: s32[1], index: 0, kind: input, shape index: {}]   ;;  %s1901_s1 = inlined_call_operand.<no memory space> [shape: f32[1], index: 1, kind: input, shape index: {}]   ;;  %s1902_s2 = inlined_call_operand.vmem [shape: f32[2,1024], index: 2, kind: input, shape index: {}, may-alias: {2,3}]   ;;  %s1903_s3 = inlined_call_operand.vmem [shape: f32[2,1024], index: 3, kind: output, shape index: {}, may-alias: {2,3}]  }
   0x1   :  { %s40_s14 = smul.u32 2654435769, %s1900_s0 }
   0x2   :  { %v1436_v1 = vshrl.u32 %v17_v0, 7  ;;  %v20_v2 = vand.u32 127, %v17_v0 }
   0x3   :  { %v41_v11 = vstv %s40_s14 }
   0x4   :  { %v21_v3 = vadd.s32 128, %v20_v2  ;;  %v22_v4 = vadd.s32 256, %v20_v2  ;;  %v23_v5 = vadd.s32 384, %v20_v2  ;;  %v24_v6 = vadd.s32 512, %v20_v2 }
   0x5   :  { %v25_v7 = vadd.s32 640, %v20_v2  ;;  %v26_v8 = vadd.s32 768, %v20_v2  ;;  %v27_v9 = vadd.s32 896, %v20_v2  ;;  %v30_v10 = vmul.u32 1024, %v1436_v1 }
   0x7   :  { %v31_v12 = vadd.s32 %v30_v10, %v20_v2  ;;  %v32_v13 = vadd.s32 %v30_v10, %v21_v3  ;;  %v33_v14 = vadd.s32 %v30_v10, %v22_v4  ;;  %v34_v15 = vadd.s32 %v30_v10, %v23_v5 }
   0x8   :  { %v35_v16 = vadd.s32 %v30_v10, %v24_v6  ;;  %v36_v17 = vadd.s32 %v30_v10, %v25_v7  ;;  %v37_v18 = vadd.s32 %v30_v10, %v26_v8  ;;  %v38_v19 = vadd.s32 %v30_v10, %v27_v9 }
   0x9   :  { %v1442_v20 = vadd.s32 %v41_v11, %v31_v12  ;;  %v1444_v21 = vadd.s32 %v41_v11, %v32_v13  ;;  %v1446_v22 = vadd.s32 %v41_v11, %v33_v14  ;;  %v1448_v23 = vadd.s32 %v41_v11, %v34_v15 }
   0xa   :  { %v1450_v24 = vadd.s32 %v41_v11, %v35_v16  ;;  %v1452_v25 = vadd.s32 %v41_v11, %v36_v17  ;;  %v1454_v26 = vadd.s32 %v41_v11, %v37_v18  ;;  %v1456_v27 = vadd.s32 %v41_v11, %v38_v19 }
   0xb   :  { %v50_v28 = vshrl.u32 %v1442_v20, 16  ;;  %v51_v29 = vshrl.u32 %v1444_v21, 16  ;;  %v52_v30 = vshrl.u32 %v1446_v22, 16  ;;  %v53_v31 = vshrl.u32 %v1448_v23, 16 }
   0xc   :  { %v54_v32 = vshrl.u32 %v1450_v24, 16  ;;  %v55_v33 = vshrl.u32 %v1452_v25, 16  ;;  %v56_v34 = vshrl.u32 %v1454_v26, 16  ;;  %v57_v35 = vshrl.u32 %v1456_v27, 16 }
   0xd   :  { %v58_v36 = vxor.u32 %v50_v28, %v1442_v20  ;;  %v59_v37 = vxor.u32 %v51_v29, %v1444_v21  ;;  %v60_v38 = vxor.u32 %v52_v30, %v1446_v22  ;;  %v61_v39 = vxor.u32 %v53_v31, %v1448_v23 }
   0xe   :  { %v62_v40 = vxor.u32 %v54_v32, %v1450_v24  ;;  %v63_v41 = vxor.u32 %v55_v33, %v1452_v25  ;;  %v64_v42 = vxor.u32 %v56_v34, %v1454_v26  ;;  %v65_v43 = vxor.u32 %v57_v35, %v1456_v27 }
   0xf   :  { %v66_v44 = vmul.u32 2146121005, %v58_v36  ;;  %v67_v45 = vmul.u32 2146121005, %v59_v37 }
  0x10   :  { %v68_v46 = vmul.u32 2146121005, %v60_v38  ;;  %v69_v47 = vmul.u32 2146121005, %v61_v39 }
  0x11   :  { %v70_v48 = vmul.u32 2146121005, %v62_v40  ;;  %v71_v49 = vmul.u32 2146121005, %v63_v41  ;;  %v74_v50 = vshrl.u32 %v66_v44, 15  ;;  %v75_v51 = vshrl.u32 %v67_v45, 15 }
  0x12   :  { %v72_v52 = vmul.u32 2146121005, %v64_v42  ;;  %v73_v53 = vmul.u32 2146121005, %v65_v43  ;;  %v76_v54 = vshrl.u32 %v68_v46, 15  ;;  %v77_v55 = vshrl.u32 %v69_v47, 15 }
  0x13   :  { %v78_v56 = vshrl.u32 %v70_v48, 15  ;;  %v79_v57 = vshrl.u32 %v71_v49, 15  ;;  %v82_v58 = vxor.u32 %v74_v50, %v66_v44  ;;  %v83_v59 = vxor.u32 %v75_v51, %v67_v45 }
  0x14   :  { %v80_v60 = vshrl.u32 %v72_v52, 15  ;;  %v81_v61 = vshrl.u32 %v73_v53, 15  ;;  %v84_v62 = vxor.u32 %v76_v54, %v68_v46  ;;  %v85_v63 = vxor.u32 %v77_v55, %v69_v47 }
  0x15   :  { %v86_v0 = vxor.u32 %v78_v56, %v70_v48  ;;  %v87_v2 = vxor.u32 %v79_v57, %v71_v49  ;;  %v90_v3 = vmul.u32 2221713035, %v82_v58  ;;  %v91_v4 = vmul.u32 2221713035, %v83_v59 }
  0x16   :  { %v88_v5 = vxor.u32 %v80_v60, %v72_v52  ;;  %v89_v6 = vxor.u32 %v81_v61, %v73_v53  ;;  %v92_v7 = vmul.u32 2221713035, %v84_v62  ;;  %v93_v8 = vmul.u32 2221713035, %v85_v63 }
  0x17   :  { %v94_v9 = vmul.u32 2221713035, %v86_v0  ;;  %v95_v10 = vmul.u32 2221713035, %v87_v2  ;;  %v98_v11 = vshrl.u32 %v90_v3, 16  ;;  %v99_v12 = vshrl.u32 %v91_v4, 16 }
  0x18   :  { %v96_v13 = vmul.u32 2221713035, %v88_v5  ;;  %v97_v14 = vmul.u32 2221713035, %v89_v6  ;;  %v100_v15 = vshrl.u32 %v92_v7, 16  ;;  %v101_v16 = vshrl.u32 %v93_v8, 16 }
  0x19   :  { %v102_v17 = vshrl.u32 %v94_v9, 16  ;;  %v103_v18 = vshrl.u32 %v95_v10, 16  ;;  %v1474_v19 = vxor.u32 %v98_v11, %v90_v3  ;;  %v1476_v28 = vxor.u32 %v99_v12, %v91_v4 }
  0x1a   :  { %v104_v29 = vshrl.u32 %v96_v13, 16  ;;  %v105_v30 = vshrl.u32 %v97_v14, 16  ;;  %v1478_v31 = vxor.u32 %v100_v15, %v92_v7  ;;  %v1480_v32 = vxor.u32 %v101_v16, %v93_v8 }
  0x1b   :  { %v1482_v33 = vxor.u32 %v102_v17, %v94_v9  ;;  %v1484_v34 = vxor.u32 %v103_v18, %v95_v10  ;;  %v114_v35 = vand.u32 65535, %v1474_v19  ;;  %v115_v36 = vand.u32 65535, %v1476_v28 }
  0x1c   :  { %v1488_v37 = vxor.u32 %v104_v29, %v96_v13  ;;  %v116_v38 = vand.u32 65535, %v1478_v31  ;;  %v117_v39 = vand.u32 65535, %v1480_v32  ;;  %v1492_v40 = vxor.u32 %v105_v30, %v97_v14 }
  0x1d   :  { %v118_v41 = vand.u32 65535, %v1482_v33  ;;  %v119_v42 = vand.u32 65535, %v1484_v34  ;;  %v122_v43 = vshrl.u32 %v114_v35, 16  ;;  %v128_v45 = vshrl.u32 %v115_v36, 16 }
  0x1e   :  { %v120_v44 = vand.u32 65535, %v1488_v37  ;;  %v134_v47 = vshrl.u32 %v116_v38, 16  ;;  %v140_v48 = vshrl.u32 %v117_v39, 16  ;;  %v121_v51 = vand.u32 65535, %v1492_v40 }
  0x1f   :  { %v124_v46 = vcvt.s32.f32 %v122_v43  ;;  %v130_v49 = vcvt.s32.f32 %v128_v45  ;;  %v146_v50 = vshrl.u32 %v118_v41, 16  ;;  %v126_v52 = vcvt.s32.f32 %v114_v35 }
  0x20   :  { %v152_v53 = vshrl.u32 %v119_v42, 16  ;;  %v136_v55 = vcvt.s32.f32 %v134_v47  ;;  %v142_v56 = vcvt.s32.f32 %v140_v48  ;;  %v158_v57 = vshrl.u32 %v120_v44, 16 }
  0x21   :  { %v125_v54 = vmul.f32 65536.0, %v124_v46  ;;  %v131_v58 = vmul.f32 65536.0, %v130_v49  ;;  %v132_v59 = vcvt.s32.f32 %v115_v36  ;;  %v148_v60 = vcvt.s32.f32 %v146_v50 }
  0x22   :  { %v1499_v61 = vadd.s32 2246822507, %v1442_v20  ;;  %v138_v62 = vcvt.s32.f32 %v116_v38  ;;  %v144_v63 = vcvt.s32.f32 %v117_v39  ;;  %v154_v0 = vcvt.s32.f32 %v152_v53 }
  0x23   :  { %v1502_v2 = vadd.s32 2246822507, %v1444_v21  ;;  %v150_v3 = vcvt.s32.f32 %v118_v41  ;;  %v156_v4 = vcvt.s32.f32 %v119_v42  ;;  %v160_v5 = vcvt.s32.f32 %v158_v57 }
  0x24   :  { %v164_v6 = vshrl.u32 %v121_v51, 16  ;;  %v127_v7 = vadd.f32 %v126_v52, %v125_v54  ;;  %v137_v8 = vmul.f32 65536.0, %v136_v55  ;;  %v143_v9 = vmul.f32 65536.0, %v142_v56 }
  0x25   :  { %v170_v10 = vshrl.u32 %v1474_v19, 16  ;;  %v133_v11 = vadd.f32 %v132_v59, %v131_v58  ;;  %v149_v12 = vmul.f32 65536.0, %v148_v60  ;;  %v171_v13 = vshrl.u32 %v1476_v28, 16 }
  0x26   :  { %v172_v14 = vshrl.u32 %v1478_v31, 16  ;;  %v155_v15 = vmul.f32 65536.0, %v154_v0  ;;  %v162_v16 = vcvt.s32.f32 %v120_v44  ;;  %v173_v17 = vshrl.u32 %v1480_v32, 16 }
  0x27   :  { %v174_v18 = vshrl.u32 %v1482_v33, 16  ;;  %v161_v29 = vmul.f32 65536.0, %v160_v5  ;;  %v166_v30 = vcvt.s32.f32 %v164_v6  ;;  %v175_v35 = vshrl.u32 %v1484_v34, 16 }
  0x28   :  { %v178_v36 = vshrl.u32 %v170_v10, 16  ;;  %v176_v38 = vshrl.u32 %v1488_v37, 16  ;;  %v177_v19 = vshrl.u32 %v1492_v40, 16  ;;  %v184_v39 = vshrl.u32 %v171_v13, 16 }
  0x29   :  { %v190_v41 = vshrl.u32 %v172_v14, 16  ;;  %v182_v42 = vcvt.s32.f32 %v170_v10  ;;  %v188_v31 = vcvt.s32.f32 %v171_v13  ;;  %v196_v43 = vshrl.u32 %v173_v17, 16 }
  0x2a   :  { %v180_v28 = vcvt.s32.f32 %v178_v36  ;;  %v186_v44 = vcvt.s32.f32 %v184_v39  ;;  %v194_v32 = vcvt.s32.f32 %v172_v14  ;;  %v202_v46 = vshrl.u32 %v174_v18, 16 }
  0x2b   :  { %v192_v45 = vcvt.s32.f32 %v190_v41  ;;  %v198_v47 = vcvt.s32.f32 %v196_v43  ;;  %v200_v48 = vcvt.s32.f32 %v173_v17  ;;  %v208_v49 = vshrl.u32 %v175_v35, 16 }
  0x2c   :  { %v181_v33 = vmul.f32 65536.0, %v180_v28  ;;  %v187_v34 = vmul.f32 65536.0, %v186_v44  ;;  %v204_v52 = vcvt.s32.f32 %v202_v46  ;;  %v206_v37 = vcvt.s32.f32 %v174_v18 }
  0x2d   :  { %v193_v50 = vmul.f32 65536.0, %v192_v45  ;;  %v199_v40 = vmul.f32 65536.0, %v198_v47  ;;  %v210_v54 = vcvt.s32.f32 %v208_v49  ;;  %v214_v55 = vshrl.u32 %v176_v38, 16 }
  0x2e   :  { %v183_v53 = vadd.f32 %v182_v42, %v181_v33  ;;  %v167_v56 = vmul.f32 65536.0, %v166_v30  ;;  %v168_v57 = vcvt.s32.f32 %v121_v51  ;;  %v189_v58 = vadd.f32 %v188_v31, %v187_v34 }
  0x2f   :  { %v205_v59 = vmul.f32 65536.0, %v204_v52  ;;  %v211_v60 = vmul.f32 65536.0, %v210_v54  ;;  %v212_v0 = vcvt.s32.f32 %v175_v35  ;;  %v216_v5 = vcvt.s32.f32 %v214_v55 }
  0x30   :  { %v220_v6 = vshrl.u32 %v177_v19, 16  ;;  %v139_v10 = vadd.f32 %v138_v62, %v137_v8  ;;  %v145_v13 = vadd.f32 %v144_v63, %v143_v9  ;;  %v195_v14 = vadd.f32 %v194_v32, %v193_v50 }
  0x31   :  { %v201_v17 = vadd.f32 %v200_v48, %v199_v40  ;;  %v151_v36 = vadd.f32 %v150_v3, %v149_v12  ;;  %v207_v39 = vadd.f32 %v206_v37, %v205_v59  ;;  %v226_v41 = vadd.f32 %v183_v53, %v127_v7 }
  0x32   :  { %v227_v18 = vadd.f32 %v189_v58, %v133_v11  ;;  %v157_v28 = vadd.f32 %v156_v4, %v155_v15  ;;  %v1512_v42 = vadd.f32 %v162_v16, %v161_v29  ;;  %v217_v43 = vmul.f32 65536.0, %v216_v5 }
  0x33   :  { %v218_v30 = vcvt.s32.f32 %v176_v38  ;;  %v1514_v51 = vadd.f32 %v168_v57, %v167_v56  ;;  %v213_v31 = vadd.f32 %v212_v0, %v211_v60  ;;  %v222_v44 = vcvt.s32.f32 %v220_v6 }
  0x34   :  { %v224_v35 = vcvt.s32.f32 %v177_v19  ;;  %v228_v45 = vadd.f32 %v195_v14, %v139_v10  ;;  %v229_v46 = vadd.f32 %v201_v17, %v145_v13  ;;  %v244_v62 = vadd.s32 2246822507, %v1446_v22 }
  0x35   :  { %v245_v63 = vadd.s32 2246822507, %v1448_v23  ;;  %v230_v3 = vadd.f32 %v207_v39, %v151_v36  ;;  %v1518_v8 = vmul.f32 1.5258789e-05, %v226_v41  ;;  %v1520_v7 = vmul.f32 1.5258789e-05, %v227_v18 }
  0x36   :  { %v246_v4 = vadd.s32 2246822507, %v1450_v24  ;;  %v1523_v9 = vadd.f32 %v218_v30, %v217_v43  ;;  %v247_v11 = vadd.s32 2246822507, %v1452_v25  ;;  %v248_v12 = vadd.s32 2246822507, %v1454_v26 }
  0x37   :  { %v249_v15 = vadd.s32 2246822507, %v1456_v27  ;;  %v223_v16 = vmul.f32 65536.0, %v222_v44  ;;  %v1528_v29 = vadd.f32 %v213_v31, %v157_v28  ;;  %v250_v38 = vshrl.u32 %v1499_v61, 16 }
  0x38   :  { %v251_v19 = vshrl.u32 %v1502_v2, 16  ;;  %v252_v32 = vshrl.u32 %v244_v62, 16  ;;  %v253_v33 = vshrl.u32 %v245_v63, 16  ;;  %v254_v47 = vshrl.u32 %v246_v4, 16 }
  0x39   :  { %v255_v48 = vshrl.u32 %v247_v11, 16  ;;  %v1532_v49 = vmul.f32 1.5258789e-05, %v228_v45  ;;  %v256_v34 = vshrl.u32 %v248_v12, 16  ;;  %v257_v50 = vshrl.u32 %v249_v15, 16 }
  0x3a   :  { %v258_v52 = vxor.u32 %v250_v38, %v1499_v61  ;;  %v259_v37 = vxor.u32 %v251_v19, %v1502_v2  ;;  %v260_v53 = vxor.u32 %v252_v32, %v244_v62  ;;  %v261_v40 = vxor.u32 %v253_v33, %v245_v63 }
  0x3b   :  { %v262_v54 = vxor.u32 %v254_v47, %v246_v4  ;;  %v263_v55 = vxor.u32 %v255_v48, %v247_v11  ;;  %v264_v56 = vxor.u32 %v256_v34, %v248_v12  ;;  %v265_v57 = vxor.u32 %v257_v50, %v249_v15 }
  0x3c   :  { %v266_v58 = vmul.u32 2146121005, %v258_v52  ;;  %v1536_v59 = vmul.f32 1.5258789e-05, %v229_v46  ;;  %v1538_v60 = vmul.f32 1.5258789e-05, %v230_v3  ;;  %v267_v0 = vmul.u32 2146121005, %v259_v37 }
  0x3d   :  { %v268_v5 = vmul.u32 2146121005, %v260_v53  ;;  %v225_v6 = vadd.f32 %v224_v35, %v223_v16  ;;  %v269_v10 = vmul.u32 2146121005, %v261_v40 }
  0x3e   :  { %v270_v13 = vmul.u32 2146121005, %v262_v54  ;;  %v274_v14 = vshrl.u32 %v266_v58, 15  ;;  %v271_v61 = vmul.u32 2146121005, %v263_v55  ;;  %v275_v2 = vshrl.u32 %v267_v0, 15 }
  0x3f   :  { %v272_v17 = vmul.u32 2146121005, %v264_v56  ;;  %v276_v36 = vshrl.u32 %v268_v5, 15  ;;  %v273_v39 = vmul.u32 2146121005, %v265_v57  ;;  %v277_v41 = vshrl.u32 %v269_v10, 15 }
  0x40   :  { %v278_v18 = vshrl.u32 %v270_v13, 15  ;;  %v282_v28 = vxor.u32 %v274_v14, %v266_v58  ;;  %v279_v43 = vshrl.u32 %v271_v61, 15  ;;  %v283_v31 = vxor.u32 %v275_v2, %v267_v0 }
  0x41   :  { %v280_v30 = vshrl.u32 %v272_v17, 15  ;;  %v284_v44 = vxor.u32 %v276_v36, %v268_v5  ;;  %v281_v45 = vshrl.u32 %v273_v39, 15  ;;  %v285_v46 = vxor.u32 %v277_v41, %v269_v10 }
  0x42   :  { %v286_v62 = vxor.u32 %v278_v18, %v270_v13  ;;  %v290_v63 = vmul.u32 2221713035, %v282_v28  ;;  %v287_v35 = vxor.u32 %v279_v43, %v271_v61  ;;  %v291_v4 = vmul.u32 2221713035, %v283_v31 }
  0x43   :  { %v288_v3 = vxor.u32 %v280_v30, %v272_v17  ;;  %v292_v11 = vmul.u32 2221713035, %v284_v44  ;;  %v289_v12 = vxor.u32 %v281_v45, %v273_v39  ;;  %v293_v15 = vmul.u32 2221713035, %v285_v46 }
  0x44   :  { %v294_v16 = vmul.u32 2221713035, %v286_v62  ;;  %v298_v38 = vshrl.u32 %v290_v63, 16  ;;  %v295_v19 = vmul.u32 2221713035, %v287_v35  ;;  %v299_v33 = vshrl.u32 %v291_v4, 16 }
  0x45   :  { %v296_v32 = vmul.u32 2221713035, %v288_v3  ;;  %v300_v47 = vshrl.u32 %v292_v11, 16  ;;  %v297_v48 = vmul.u32 2221713035, %v289_v12  ;;  %v301_v34 = vshrl.u32 %v293_v15, 16 }
  0x46   :  { %v302_v50 = vshrl.u32 %v294_v16, 16  ;;  %v1540_v52 = vxor.u32 %v298_v38, %v290_v63  ;;  %v303_v37 = vshrl.u32 %v295_v19, 16  ;;  %v1542_v40 = vxor.u32 %v299_v33, %v291_v4 }
  0x47   :  { %v304_v53 = vshrl.u32 %v296_v32, 16  ;;  %v1544_v54 = vxor.u32 %v300_v47, %v292_v11  ;;  %v305_v55 = vshrl.u32 %v297_v48, 16  ;;  %v1546_v56 = vxor.u32 %v301_v34, %v293_v15 }
  0x48   :  { %v1548_v57 = vxor.u32 %v302_v50, %v294_v16  ;;  %v314_v58 = vand.u32 65535, %v1540_v52  ;;  %v1551_v0 = vxor.u32 %v303_v37, %v295_v19  ;;  %v315_v10 = vand.u32 65535, %v1542_v40 }
  0x49   :  { %v1553_v5 = vxor.u32 %v304_v53, %v296_v32  ;;  %v316_v13 = vand.u32 65535, %v1544_v54  ;;  %v1557_v14 = vxor.u32 %v305_v55, %v297_v48  ;;  %v317_v61 = vand.u32 65535, %v1546_v56 }
  0x4a   :  { %v318_v17 = vand.u32 65535, %v1548_v57  ;;  %v322_v2 = vshrl.u32 %v314_v58, 16  ;;  %v1563_v36 = vadd.f32 %v1523_v9, %v1512_v42  ;;  %v1566_v39 = vadd.f32 %v225_v6, %v1514_v51 }
  0x4b   :  { %v319_v41 = vand.u32 65535, %v1551_v0  ;;  %v328_v18 = vshrl.u32 %v315_v10, 16  ;;  %v320_v28 = vand.u32 65535, %v1553_v5  ;;  %v326_v30 = vcvt.s32.f32 %v314_v58 }
  0x4c   :  { %v324_v43 = vcvt.s32.f32 %v322_v2  ;;  %v334_v31 = vshrl.u32 %v316_v13, 16  ;;  %v321_v44 = vand.u32 65535, %v1557_v14  ;;  %v332_v46 = vcvt.s32.f32 %v315_v10 }
  0x4d   :  { %v330_v45 = vcvt.s32.f32 %v328_v18  ;;  %v340_v62 = vshrl.u32 %v317_v61, 16  ;;  %v338_v42 = vcvt.s32.f32 %v316_v13  ;;  %v346_v9 = vshrl.u32 %v318_v17, 16 }
  0x4e   :  { %v325_v63 = vmul.f32 65536.0, %v324_v43  ;;  %v336_v35 = vcvt.s32.f32 %v334_v31  ;;  %v344_v6 = vcvt.s32.f32 %v317_v61  ;;  %v352_v4 = vshrl.u32 %v319_v41, 16 }
  0x4f   :  { %v331_v3 = vmul.f32 65536.0, %v330_v45  ;;  %v342_v51 = vcvt.s32.f32 %v340_v62  ;;  %v348_v12 = vcvt.s32.f32 %v346_v9  ;;  %v350_v15 = vcvt.s32.f32 %v318_v17 }
  0x50   :  { %v337_v11 = vmul.f32 65536.0, %v336_v35  ;;  %v358_v16 = vshrl.u32 %v320_v28, 16  ;;  %v327_v38 = vadd.f32 %v326_v30, %v325_v63  ;;  %v354_v32 = vcvt.s32.f32 %v352_v4 }
  0x51   :  { %v343_v19 = vmul.f32 65536.0, %v342_v51  ;;  %v356_v33 = vcvt.s32.f32 %v319_v41  ;;  %v349_v47 = vmul.f32 65536.0, %v348_v12  ;;  %v362_v34 = vcvt.s32.f32 %v320_v28 }
  0x52   :  { %v360_v48 = vcvt.s32.f32 %v358_v16  ;;  %v364_v50 = vshrl.u32 %v321_v44, 16  ;;  %v333_v37 = vadd.f32 %v332_v46, %v331_v3  ;;  %v339_v53 = vadd.f32 %v338_v42, %v337_v11 }
  0x53   :  { %v355_v55 = vmul.f32 65536.0, %v354_v32  ;;  %v370_v58 = vshrl.u32 %v1540_v52, 16  ;;  %v345_v10 = vadd.f32 %v344_v6, %v343_v19  ;;  %v1572_v61 = vcvt.s32.f32 %v321_v44 }
  0x54   :  { %v361_v13 = vmul.f32 65536.0, %v360_v48  ;;  %v371_v17 = vshrl.u32 %v1542_v40, 16  ;;  %v351_v2 = vadd.f32 %v350_v15, %v349_v47  ;;  %v366_v18 = vcvt.s32.f32 %v364_v50 }
  0x55   :  { %v372_v43 = vshrl.u32 %v1544_v54, 16  ;;  %v373_v41 = vshrl.u32 %v1546_v56, 16  ;;  %v357_v30 = vadd.f32 %v356_v33, %v355_v55  ;;  %v374_v31 = vshrl.u32 %v1548_v57, 16 }
  0x56   :  { %v363_v28 = vadd.f32 %v362_v34, %v361_v13  ;;  %v375_v45 = vshrl.u32 %v1551_v0, 16  ;;  %v376_v52 = vshrl.u32 %v1553_v5, 16  ;;  %v377_v46 = vshrl.u32 %v1557_v14, 16 }
  0x57   :  { %v378_v44 = vshrl.u32 %v370_v58, 16  ;;  %v384_v62 = vshrl.u32 %v371_v17, 16  ;;  %v382_v63 = vcvt.s32.f32 %v370_v58  ;;  %v388_v40 = vcvt.s32.f32 %v371_v17 }
  0x58   :  { %v390_v35 = vshrl.u32 %v372_v43, 16  ;;  %v394_v42 = vcvt.s32.f32 %v372_v43  ;;  %v396_v3 = vshrl.u32 %v373_v41, 16  ;;  %v400_v56 = vcvt.s32.f32 %v373_v41 }
  0x59   :  { %v380_v9 = vcvt.s32.f32 %v378_v44  ;;  %v386_v54 = vcvt.s32.f32 %v384_v62  ;;  %v402_v6 = vshrl.u32 %v374_v31, 16  ;;  %v406_v4 = vcvt.s32.f32 %v374_v31 }
  0x5a   :  { %v392_v51 = vcvt.s32.f32 %v390_v35  ;;  %v408_v57 = vshrl.u32 %v375_v45, 16  ;;  %v398_v12 = vcvt.s32.f32 %v396_v3  ;;  %v412_v5 = vcvt.s32.f32 %v375_v45 }
  0x5b   :  { %v381_v11 = vmul.f32 65536.0, %v380_v9  ;;  %v387_v0 = vmul.f32 65536.0, %v386_v54  ;;  %v404_v14 = vcvt.s32.f32 %v402_v6  ;;  %v414_v19 = vshrl.u32 %v376_v52, 16 }
  0x5c   :  { %v393_v15 = vmul.f32 65536.0, %v392_v51  ;;  %v410_v16 = vcvt.s32.f32 %v408_v57  ;;  %v399_v47 = vmul.f32 65536.0, %v398_v12  ;;  %v418_v48 = vcvt.s32.f32 %v376_v52 }
  0x5d   :  { %v383_v32 = vadd.f32 %v382_v63, %v381_v11  ;;  %v389_v33 = vadd.f32 %v388_v40, %v387_v0  ;;  %v405_v50 = vmul.f32 65536.0, %v404_v14  ;;  %v416_v58 = vcvt.s32.f32 %v414_v19 }
  0x5e   :  { %v395_v34 = vadd.f32 %v394_v42, %v393_v15  ;;  %v411_v55 = vmul.f32 65536.0, %v410_v16  ;;  %v367_v13 = vmul.f32 65536.0, %v366_v18  ;;  %v401_v17 = vadd.f32 %v400_v56, %v399_v47 }
  0x5f   :  { %v420_v43 = vshrl.u32 %v377_v46, 16  ;;  %v426_v41 = vadd.f32 %v383_v32, %v327_v38  ;;  %v407_v31 = vadd.f32 %v406_v4, %v405_v50  ;;  %v417_v62 = vmul.f32 65536.0, %v416_v58 }
  0x60   :  { %v413_v44 = vadd.f32 %v412_v5, %v411_v55  ;;  %v427_v45 = vadd.f32 %v389_v33, %v333_v37  ;;  %v428_v9 = vadd.f32 %v395_v34, %v339_v53  ;;  %v429_v54 = vadd.f32 %v401_v17, %v345_v10 }
  0x61   :  { %v422_v35 = vcvt.s32.f32 %v420_v43  ;;  %v434_v3 = vmul.f32 1.5258789e-05, %v426_v41  ;;  %v419_v63 = vadd.f32 %v418_v48, %v417_v62  ;;  %v430_v40 = vadd.f32 %v407_v31, %v351_v2 }
  0x62   :  { %v431_v51 = vadd.f32 %v413_v44, %v357_v30  ;;  %v435_v52 = vmul.f32 1.5258789e-05, %v427_v45  ;;  %v239_v42 = vmul.f32 1.5258789e-05, %v1528_v29  ;;  %v1583_v6 = vmul.f32 1.5258789e-05, %v1563_v36 }
  0x63   :  { %v423_v18 = vmul.f32 65536.0, %v422_v35  ;;  %v424_v56 = vcvt.s32.f32 %v377_v46  ;;  %v1586_v38 = vmul.f32 1.5258789e-05, %v1566_v39  ;;  %v369_v37 = vadd.f32 %v1572_v61, %v367_v13 }
  0x64   :  { %v436_v4 = vmul.f32 1.5258789e-05, %v428_v9  ;;  %v450_v53 = vadd.s32 198677718, %v1442_v20  ;;  %v432_v10 = vadd.f32 %v419_v63, %v363_v28  ;;  %v437_v57 = vmul.f32 1.5258789e-05, %v429_v54 }
  0x65   :  { %v1591_v2 = vadd.f32 %v434_v3, %v1518_v8  ;;  %v451_v29 = vadd.s32 198677718, %v1444_v21  ;;  %v438_v30 = vmul.f32 1.5258789e-05, %v430_v40  ;;  %v439_v36 = vmul.f32 1.5258789e-05, %v431_v51 }
  0x66   :  { %v1595_v11 = vadd.f32 %v435_v52, %v1520_v7  ;;  %v452_v39 = vadd.s32 198677718, %v1446_v22  ;;  %v425_v46 = vadd.f32 %v424_v56, %v423_v18  ;;  %v453_v61 = vadd.s32 198677718, %v1448_v23 }
  0x67   :  { %v454_v0 = vadd.s32 198677718, %v1450_v24  ;;  %v455_v28 = vadd.s32 198677718, %v1452_v25  ;;  %v1602_v12 = vadd.f32 %v436_v4, %v1532_v49  ;;  %v456_v8 = vadd.s32 198677718, %v1454_v26 }
  0x68   :  { %v457_v5 = vadd.s32 198677718, %v1456_v27  ;;  %v458_v15 = vshrl.u32 %v450_v53, 16  ;;  %v1607_v7 = vadd.f32 %v437_v57, %v1536_v59  ;;  %v459_v14 = vshrl.u32 %v451_v29, 16 }
  0x69   :  { %v460_v16 = vshrl.u32 %v452_v39, 16  ;;  %v461_v19 = vshrl.u32 %v453_v61, 16  ;;  %v462_v32 = vshrl.u32 %v454_v0, 16  ;;  %v463_v33 = vshrl.u32 %v455_v28, 16 }
  0x6a   :  { %v464_v47 = vshrl.u32 %v456_v8, 16  ;;  %v465_v48 = vshrl.u32 %v457_v5, 16  ;;  %v1609_v34 = vmul.f32 1.5258789e-05, %v432_v10  ;;  %v466_v50 = vxor.u32 %v458_v15, %v450_v53 }
  0x6b   :  { %v467_v49 = vxor.u32 %v459_v14, %v451_v29  ;;  %v468_v55 = vxor.u32 %v460_v16, %v452_v39  ;;  %v469_v58 = vxor.u32 %v461_v19, %v453_v61  ;;  %v470_v13 = vxor.u32 %v462_v32, %v454_v0 }
  0x6c   :  { %v471_v17 = vxor.u32 %v463_v33, %v455_v28  ;;  %v472_v43 = vxor.u32 %v464_v47, %v456_v8  ;;  %v1612_v41 = vadd.f32 %v438_v30, %v1538_v60  ;;  %v473_v59 = vxor.u32 %v465_v48, %v457_v5 }
  0x6d   :  { %v474_v31 = vmul.u32 2146121005, %v466_v50  ;;  %v475_v44 = vmul.u32 2146121005, %v467_v49  ;;  %v433_v62 = vadd.f32 %v425_v46, %v369_v37  ;;  %v1614_v45 = vadd.f32 %v439_v36, %v239_v42 }
  0x6e   :  { %v476_v35 = vmul.u32 2146121005, %v468_v55  ;;  %v477_v9 = vmul.u32 2146121005, %v469_v58 }
  0x6f   :  { %v478_v54 = vmul.u32 2146121005, %v470_v13  ;;  %v479_v3 = vmul.u32 2146121005, %v471_v17  ;;  %v482_v63 = vshrl.u32 %v474_v31, 15  ;;  %v483_v40 = vshrl.u32 %v475_v44, 15 }
  0x70   :  { %v480_v51 = vmul.u32 2146121005, %v472_v43  ;;  %v481_v52 = vmul.u32 2146121005, %v473_v59  ;;  %v484_v18 = vshrl.u32 %v476_v35, 15  ;;  %v485_v56 = vshrl.u32 %v477_v9, 15 }
  0x71   :  { %v486_v4 = vshrl.u32 %v478_v54, 15  ;;  %v487_v53 = vshrl.u32 %v479_v3, 15  ;;  %v490_v60 = vxor.u32 %v482_v63, %v474_v31  ;;  %v491_v10 = vxor.u32 %v483_v40, %v475_v44 }
  0x72   :  { %v488_v57 = vshrl.u32 %v480_v51, 15  ;;  %v489_v29 = vshrl.u32 %v481_v52, 15  ;;  %v492_v30 = vxor.u32 %v484_v18, %v476_v35  ;;  %v493_v37 = vxor.u32 %v485_v56, %v477_v9 }
  0x73   :  { %v494_v42 = vxor.u32 %v486_v4, %v478_v54  ;;  %v495_v36 = vxor.u32 %v487_v53, %v479_v3  ;;  %v498_v39 = vmul.u32 2221713035, %v490_v60  ;;  %v499_v46 = vmul.u32 2221713035, %v491_v10 }
  0x74   :  { %v496_v61 = vxor.u32 %v488_v57, %v480_v51  ;;  %v497_v0 = vxor.u32 %v489_v29, %v481_v52  ;;  %v500_v28 = vmul.u32 2221713035, %v492_v30  ;;  %v501_v8 = vmul.u32 2221713035, %v493_v37 }
  0x75   :  { %v502_v5 = vmul.u32 2221713035, %v494_v42  ;;  %v503_v15 = vmul.u32 2221713035, %v495_v36  ;;  %v506_v14 = vshrl.u32 %v498_v39, 16  ;;  %v507_v16 = vshrl.u32 %v499_v46, 16 }
  0x76   :  { %v504_v19 = vmul.u32 2221713035, %v496_v61  ;;  %v505_v32 = vmul.u32 2221713035, %v497_v0  ;;  %v508_v33 = vshrl.u32 %v500_v28, 16  ;;  %v509_v47 = vshrl.u32 %v501_v8, 16 }
  0x77   :  { %v510_v48 = vshrl.u32 %v502_v5, 16  ;;  %v511_v50 = vshrl.u32 %v503_v15, 16  ;;  %v1616_v49 = vxor.u32 %v506_v14, %v498_v39  ;;  %v1618_v55 = vxor.u32 %v507_v16, %v499_v46 }
  0x78   :  { %v512_v58 = vshrl.u32 %v504_v19, 16  ;;  %v513_v13 = vshrl.u32 %v505_v32, 16  ;;  %v1620_v17 = vxor.u32 %v508_v33, %v500_v28  ;;  %v1622_v43 = vxor.u32 %v509_v47, %v501_v8 }
  0x79   :  { %v1624_v59 = vxor.u32 %v510_v48, %v502_v5  ;;  %v1626_v31 = vxor.u32 %v511_v50, %v503_v15  ;;  %v522_v44 = vand.u32 65535, %v1616_v49  ;;  %v523_v35 = vand.u32 65535, %v1618_v55 }
  0x7a   :  { %v1630_v9 = vxor.u32 %v512_v58, %v504_v19  ;;  %v1632_v54 = vxor.u32 %v513_v13, %v505_v32  ;;  %v524_v3 = vand.u32 65535, %v1620_v17  ;;  %v525_v63 = vand.u32 65535, %v1622_v43 }
  0x7b   :  { %v1636_v40 = vmul.f32 1.5258789e-05, %v433_v62  ;;  %v526_v51 = vand.u32 65535, %v1624_v59  ;;  %v527_v52 = vand.u32 65535, %v1626_v31  ;;  %v530_v18 = vshrl.u32 %v522_v44, 16 }
  0x7c   :  { %v528_v56 = vand.u32 65535, %v1630_v9  ;;  %v529_v4 = vand.u32 65535, %v1632_v54  ;;  %v534_v53 = vcvt.s32.f32 %v522_v44  ;;  %v536_v60 = vshrl.u32 %v523_v35, 16 }
  0x7d   :  { %v532_v10 = vcvt.s32.f32 %v530_v18  ;;  %v540_v57 = vcvt.s32.f32 %v523_v35  ;;  %v542_v29 = vshrl.u32 %v524_v3, 16  ;;  %v548_v30 = vshrl.u32 %v525_v63, 16 }
  0x7e   :  { %v538_v37 = vcvt.s32.f32 %v536_v60  ;;  %v546_v42 = vcvt.s32.f32 %v524_v3  ;;  %v552_v36 = vcvt.s32.f32 %v525_v63  ;;  %v554_v62 = vshrl.u32 %v526_v51, 16 }
  0x7f   :  { %v533_v39 = vmul.f32 65536.0, %v532_v10  ;;  %v544_v46 = vcvt.s32.f32 %v542_v29  ;;  %v550_v61 = vcvt.s32.f32 %v548_v30  ;;  %v560_v0 = vshrl.u32 %v527_v52, 16 }
  0x80   :  { %v539_v28 = vmul.f32 65536.0, %v538_v37  ;;  %v556_v8 = vcvt.s32.f32 %v554_v62  ;;  %v558_v5 = vcvt.s32.f32 %v526_v51  ;;  %v566_v15 = vshrl.u32 %v528_v56, 16 }
  0x81   :  { %v545_v14 = vmul.f32 65536.0, %v544_v46  ;;  %v551_v16 = vmul.f32 65536.0, %v550_v61  ;;  %v562_v19 = vcvt.s32.f32 %v560_v0  ;;  %v564_v32 = vcvt.s32.f32 %v527_v52 }
  0x82   :  { %v535_v33 = vadd.f32 %v534_v53, %v533_v39  ;;  %v557_v47 = vmul.f32 65536.0, %v556_v8  ;;  %v568_v48 = vcvt.s32.f32 %v566_v15  ;;  %v570_v50 = vcvt.s32.f32 %v528_v56 }
  0x83   :  { %v541_v58 = vadd.f32 %v540_v57, %v539_v28  ;;  %v547_v13 = vadd.f32 %v546_v42, %v545_v14  ;;  %v563_v44 = vmul.f32 65536.0, %v562_v19  ;;  %v572_v35 = vshrl.u32 %v529_v4, 16 }
  0x84   :  { %v553_v3 = vadd.f32 %v552_v36, %v551_v16  ;;  %v559_v63 = vadd.f32 %v558_v5, %v557_v47  ;;  %v569_v18 = vmul.f32 65536.0, %v568_v48  ;;  %v578_v60 = vshrl.u32 %v1616_v49, 16 }
  0x85   :  { %v574_v10 = vcvt.s32.f32 %v572_v35  ;;  %v1643_v51 = vcvt.s32.f32 %v529_v4  ;;  %v579_v29 = vshrl.u32 %v1618_v55, 16  ;;  %v580_v52 = vshrl.u32 %v1620_v17, 16 }
  0x86   :  { %v565_v53 = vadd.f32 %v564_v32, %v563_v44  ;;  %v1647_v30 = vadd.f32 %v570_v50, %v569_v18  ;;  %v581_v56 = vshrl.u32 %v1622_v43, 16  ;;  %v582_v57 = vshrl.u32 %v1624_v59, 16 }
  0x87   :  { %v575_v37 = vmul.f32 65536.0, %v574_v10  ;;  %v583_v42 = vshrl.u32 %v1626_v31, 16  ;;  %v584_v36 = vshrl.u32 %v1630_v9, 16  ;;  %v586_v49 = vshrl.u32 %v578_v60, 16 }
  0x88   :  { %v585_v4 = vshrl.u32 %v1632_v54, 16  ;;  %v590_v62 = vcvt.s32.f32 %v578_v60  ;;  %v592_v39 = vshrl.u32 %v579_v29, 16  ;;  %v598_v55 = vshrl.u32 %v580_v52, 16 }
  0x89   :  { %v588_v46 = vcvt.s32.f32 %v586_v49  ;;  %v596_v17 = vcvt.s32.f32 %v579_v29  ;;  %v602_v61 = vcvt.s32.f32 %v580_v52  ;;  %v604_v0 = vshrl.u32 %v581_v56, 16 }
  0x8a   :  { %v594_v28 = vcvt.s32.f32 %v592_v39  ;;  %v600_v8 = vcvt.s32.f32 %v598_v55  ;;  %v608_v43 = vcvt.s32.f32 %v581_v56  ;;  %v610_v5 = vshrl.u32 %v582_v57, 16 }
  0x8b   :  { %v589_v59 = vmul.f32 65536.0, %v588_v46  ;;  %v606_v15 = vcvt.s32.f32 %v604_v0  ;;  %v614_v14 = vcvt.s32.f32 %v582_v57  ;;  %v616_v31 = vshrl.u32 %v583_v42, 16 }
  0x8c   :  { %v595_v16 = vmul.f32 65536.0, %v594_v28  ;;  %v601_v9 = vmul.f32 65536.0, %v600_v8  ;;  %v612_v19 = vcvt.s32.f32 %v610_v5  ;;  %v620_v32 = vcvt.s32.f32 %v583_v42 }
  0x8d   :  { %v591_v54 = vadd.f32 %v590_v62, %v589_v59  ;;  %v607_v47 = vmul.f32 65536.0, %v606_v15  ;;  %v618_v48 = vcvt.s32.f32 %v616_v31  ;;  %v622_v50 = vshrl.u32 %v584_v36, 16 }
  0x8e   :  { %v597_v44 = vadd.f32 %v596_v17, %v595_v16  ;;  %v603_v35 = vadd.f32 %v602_v61, %v601_v9  ;;  %v613_v18 = vmul.f32 65536.0, %v612_v19  ;;  %v626_v60 = vcvt.s32.f32 %v584_v36 }
  0x8f   :  { %v609_v10 = vadd.f32 %v608_v43, %v607_v47  ;;  %v619_v29 = vmul.f32 65536.0, %v618_v48  ;;  %v624_v52 = vcvt.s32.f32 %v622_v50  ;;  %v628_v56 = vshrl.u32 %v585_v4, 16 }
  0x90   :  { %v615_v49 = vadd.f32 %v614_v14, %v613_v18  ;;  %v632_v39 = vcvt.s32.f32 %v585_v4  ;;  %v634_v57 = vadd.f32 %v591_v54, %v535_v33  ;;  %v635_v55 = vadd.f32 %v597_v44, %v541_v58 }
  0x91   :  { %v621_v46 = vadd.f32 %v620_v32, %v619_v29  ;;  %v625_v0 = vmul.f32 65536.0, %v624_v52  ;;  %v630_v28 = vcvt.s32.f32 %v628_v56  ;;  %v636_v42 = vadd.f32 %v603_v35, %v547_v13 }
  0x92   :  { %v637_v62 = vadd.f32 %v609_v10, %v553_v3  ;;  %v638_v8 = vadd.f32 %v615_v49, %v559_v63  ;;  %v642_v5 = vmul.f32 1.5258789e-05, %v634_v57  ;;  %v643_v59 = vmul.f32 1.5258789e-05, %v635_v55 }
  0x93   :  { %v627_v17 = vadd.f32 %v626_v60, %v625_v0  ;;  %v631_v61 = vmul.f32 65536.0, %v630_v28  ;;  %v639_v15 = vadd.f32 %v621_v46, %v565_v53  ;;  %v644_v36 = vmul.f32 1.5258789e-05, %v636_v42 }
  0x94   :  { %v448_v43 = vadd.f32 %v1609_v34, %v1583_v6  ;;  %v1658_v4 = vadd.f32 %v1636_v40, %v1586_v38  ;;  %v645_v33 = vmul.f32 1.5258789e-05, %v637_v62  ;;  %v658_v58 = vadd.s32 2445500225, %v1442_v20 }
  0x95   :  { %v577_v13 = vadd.f32 %v1643_v51, %v575_v37  ;;  %v633_v3 = vadd.f32 %v632_v39, %v631_v61  ;;  %v646_v63 = vmul.f32 1.5258789e-05, %v638_v8  ;;  %v659_v14 = vadd.s32 2445500225, %v1444_v21 }
  0x96   :  { %v1664_v31 = vadd.f32 %v642_v5, %v1591_v2  ;;  %v1667_v53 = vadd.f32 %v643_v59, %v1595_v11  ;;  %v660_v6 = vadd.s32 2445500225, %v1446_v22  ;;  %v661_v38 = vadd.s32 2445500225, %v1448_v23 }
  0x97   :  { %v640_v34 = vadd.f32 %v627_v17, %v1647_v30  ;;  %v647_v40 = vmul.f32 1.5258789e-05, %v639_v15  ;;  %v1673_v16 = vadd.f32 %v644_v36, %v1602_v12  ;;  %v662_v51 = vadd.s32 2445500225, %v1450_v24 }
  0x98   :  { %v1677_v37 = vadd.f32 %v645_v33, %v1607_v7  ;;  %v663_v2 = vadd.s32 2445500225, %v1452_v25  ;;  %v664_v11 = vadd.s32 2445500225, %v1454_v26  ;;  %v665_v9 = vadd.s32 2445500225, %v1456_v27 }
  0x99   :  { %v641_v19 = vadd.f32 %v633_v3, %v577_v13  ;;  %v1683_v32 = vadd.f32 %v646_v63, %v1612_v41  ;;  %v666_v30 = vshrl.u32 %v658_v58, 16  ;;  %v667_v54 = vshrl.u32 %v659_v14, 16 }
  0x9a   :  { %v668_v47 = vshrl.u32 %v660_v6, 16  ;;  %v669_v12 = vshrl.u32 %v661_v38, 16  ;;  %v670_v48 = vshrl.u32 %v662_v51, 16  ;;  %v671_v50 = vshrl.u32 %v663_v2, 16 }
  0x9b   :  { %v648_v44 = vmul.f32 1.5258789e-05, %v640_v34  ;;  %v672_v35 = vshrl.u32 %v664_v11, 16  ;;  %v673_v7 = vshrl.u32 %v665_v9, 16  ;;  %v674_v18 = vxor.u32 %v666_v30, %v658_v58 }
  0x9c   :  { %v675_v60 = vxor.u32 %v667_v54, %v659_v14  ;;  %v676_v10 = vxor.u32 %v668_v47, %v660_v6  ;;  %v677_v29 = vxor.u32 %v669_v12, %v661_v38  ;;  %v678_v52 = vxor.u32 %v670_v48, %v662_v51 }
  0x9d   :  { %v679_v56 = vxor.u32 %v671_v50, %v663_v2  ;;  %v680_v49 = vxor.u32 %v672_v35, %v664_v11  ;;  %v681_v39 = vxor.u32 %v673_v7, %v665_v9  ;;  %v682_v57 = vmul.u32 2146121005, %v674_v18 }
  0x9e   :  { %v649_v41 = vmul.f32 1.5258789e-05, %v641_v19  ;;  %v1686_v55 = vadd.f32 %v647_v40, %v1614_v45  ;;  %v683_v46 = vmul.u32 2146121005, %v675_v60  ;;  %v684_v0 = vmul.u32 2146121005, %v676_v10 }
  0x9f   :  { %v1688_v28 = vadd.f32 %v648_v44, %v448_v43  ;;  %v685_v42 = vmul.u32 2146121005, %v677_v29  ;;  %v686_v62 = vmul.u32 2146121005, %v678_v52  ;;  %v690_v8 = vshrl.u32 %v682_v57, 15 }
  0xa0   :  { %v687_v5 = vmul.u32 2146121005, %v679_v56  ;;  %v688_v59 = vmul.u32 2146121005, %v680_v49  ;;  %v691_v17 = vshrl.u32 %v683_v46, 15  ;;  %v692_v61 = vshrl.u32 %v684_v0, 15 }
  0xa1   :  { %v689_v15 = vmul.u32 2146121005, %v681_v39  ;;  %v693_v36 = vshrl.u32 %v685_v42, 15  ;;  %v694_v33 = vshrl.u32 %v686_v62, 15  ;;  %v698_v58 = vxor.u32 %v690_v8, %v682_v57 }
  0xa2   :  { %v695_v13 = vshrl.u32 %v687_v5, 15  ;;  %v696_v3 = vshrl.u32 %v688_v59, 15  ;;  %v699_v63 = vxor.u32 %v691_v17, %v683_v46  ;;  %v700_v45 = vxor.u32 %v692_v61, %v684_v0 }
  0xa3   :  { %v697_v14 = vshrl.u32 %v689_v15, 15  ;;  %v701_v6 = vxor.u32 %v693_v36, %v685_v42  ;;  %v702_v38 = vxor.u32 %v694_v33, %v686_v62  ;;  %v706_v43 = vmul.u32 2221713035, %v698_v58 }
  0xa4   :  { %v703_v34 = vxor.u32 %v695_v13, %v687_v5  ;;  %v704_v40 = vxor.u32 %v696_v3, %v688_v59  ;;  %v707_v51 = vmul.u32 2221713035, %v699_v63  ;;  %v708_v2 = vmul.u32 2221713035, %v700_v45 }
  0xa5   :  { %v705_v11 = vxor.u32 %v697_v14, %v689_v15  ;;  %v709_v9 = vmul.u32 2221713035, %v701_v6  ;;  %v710_v19 = vmul.u32 2221713035, %v702_v38  ;;  %v714_v30 = vshrl.u32 %v706_v43, 16 }
  0xa6   :  { %v711_v54 = vmul.u32 2221713035, %v703_v34  ;;  %v712_v47 = vmul.u32 2221713035, %v704_v40  ;;  %v715_v12 = vshrl.u32 %v707_v51, 16  ;;  %v716_v48 = vshrl.u32 %v708_v2, 16 }
  0xa7   :  { %v713_v50 = vmul.u32 2221713035, %v705_v11  ;;  %v717_v44 = vshrl.u32 %v709_v9, 16  ;;  %v718_v35 = vshrl.u32 %v710_v19, 16  ;;  %v1690_v7 = vxor.u32 %v714_v30, %v706_v43 }
  0xa8   :  { %v719_v18 = vshrl.u32 %v711_v54, 16  ;;  %v720_v60 = vshrl.u32 %v712_v47, 16  ;;  %v1692_v10 = vxor.u32 %v715_v12, %v707_v51  ;;  %v1694_v29 = vxor.u32 %v716_v48, %v708_v2 }
  0xa9   :  { %v721_v52 = vshrl.u32 %v713_v50, 16  ;;  %v1696_v56 = vxor.u32 %v717_v44, %v709_v9  ;;  %v1698_v49 = vxor.u32 %v718_v35, %v710_v19  ;;  %v730_v39 = vand.u32 65535, %v1690_v7 }
  0xaa   :  { %v1701_v57 = vxor.u32 %v719_v18, %v711_v54  ;;  %v1703_v46 = vxor.u32 %v720_v60, %v712_v47  ;;  %v731_v0 = vand.u32 65535, %v1692_v10  ;;  %v732_v42 = vand.u32 65535, %v1694_v29 }
  0xab   :  { %v1707_v62 = vxor.u32 %v721_v52, %v713_v50  ;;  %v733_v8 = vand.u32 65535, %v1696_v56  ;;  %v734_v5 = vand.u32 65535, %v1698_v49  ;;  %v738_v59 = vshrl.u32 %v730_v39, 16 }
  0xac   :  { %v1712_v17 = vadd.f32 %v649_v41, %v1658_v4  ;;  %v735_v61 = vand.u32 65535, %v1701_v57  ;;  %v736_v15 = vand.u32 65535, %v1703_v46  ;;  %v744_v36 = vshrl.u32 %v731_v0, 16 }
  0xad   :  { %v737_v33 = vand.u32 65535, %v1707_v62  ;;  %v740_v58 = vcvt.s32.f32 %v738_v59  ;;  %v742_v13 = vcvt.s32.f32 %v730_v39  ;;  %v750_v3 = vshrl.u32 %v732_v42, 16 }
  0xae   :  { %v746_v63 = vcvt.s32.f32 %v744_v36  ;;  %v748_v45 = vcvt.s32.f32 %v731_v0  ;;  %v754_v14 = vcvt.s32.f32 %v732_v42  ;;  %v756_v6 = vshrl.u32 %v733_v8, 16 }
  0xaf   :  { %v741_v38 = vmul.f32 65536.0, %v740_v58  ;;  %v752_v43 = vcvt.s32.f32 %v750_v3  ;;  %v760_v34 = vcvt.s32.f32 %v733_v8  ;;  %v762_v40 = vshrl.u32 %v734_v5, 16 }
  0xb0   :  { %v747_v4 = vmul.f32 65536.0, %v746_v63  ;;  %v758_v41 = vcvt.s32.f32 %v756_v6  ;;  %v766_v51 = vcvt.s32.f32 %v734_v5  ;;  %v768_v2 = vshrl.u32 %v735_v61, 16 }
  0xb1   :  { %v753_v11 = vmul.f32 65536.0, %v752_v43  ;;  %v764_v9 = vcvt.s32.f32 %v762_v40  ;;  %v772_v19 = vcvt.s32.f32 %v735_v61  ;;  %v774_v30 = vshrl.u32 %v736_v15, 16 }
  0xb2   :  { %v743_v54 = vadd.f32 %v742_v13, %v741_v38  ;;  %v749_v47 = vadd.f32 %v748_v45, %v747_v4  ;;  %v759_v12 = vmul.f32 65536.0, %v758_v41  ;;  %v770_v48 = vcvt.s32.f32 %v768_v2 }
  0xb3   :  { %v765_v50 = vmul.f32 65536.0, %v764_v9  ;;  %v776_v44 = vcvt.s32.f32 %v774_v30  ;;  %v778_v35 = vcvt.s32.f32 %v736_v15  ;;  %v780_v18 = vshrl.u32 %v737_v33, 16 }
  0xb4   :  { %v755_v60 = vadd.f32 %v754_v14, %v753_v11  ;;  %v761_v52 = vadd.f32 %v760_v34, %v759_v12  ;;  %v771_v39 = vmul.f32 65536.0, %v770_v48  ;;  %v786_v0 = vshrl.u32 %v1690_v7, 16 }
  0xb5   :  { %v777_v42 = vmul.f32 65536.0, %v776_v44  ;;  %v782_v8 = vcvt.s32.f32 %v780_v18  ;;  %v784_v5 = vcvt.s32.f32 %v737_v33  ;;  %v787_v59 = vshrl.u32 %v1692_v10, 16 }
  0xb6   :  { %v767_v61 = vadd.f32 %v766_v51, %v765_v50  ;;  %v773_v36 = vadd.f32 %v772_v19, %v771_v39  ;;  %v788_v58 = vshrl.u32 %v1694_v29, 16  ;;  %v789_v13 = vshrl.u32 %v1696_v56, 16 }
  0xb7   :  { %v779_v3 = vadd.f32 %v778_v35, %v777_v42  ;;  %v783_v63 = vmul.f32 65536.0, %v782_v8  ;;  %v790_v15 = vshrl.u32 %v1698_v49, 16  ;;  %v791_v45 = vshrl.u32 %v1701_v57, 16 }
  0xb8   :  { %v792_v14 = vshrl.u32 %v1703_v46, 16  ;;  %v793_v7 = vshrl.u32 %v1707_v62, 16  ;;  %v794_v6 = vshrl.u32 %v786_v0, 16  ;;  %v800_v33 = vshrl.u32 %v787_v59, 16 }
  0xb9   :  { %v798_v38 = vcvt.s32.f32 %v786_v0  ;;  %v804_v10 = vcvt.s32.f32 %v787_v59  ;;  %v806_v43 = vshrl.u32 %v788_v58, 16  ;;  %v810_v34 = vcvt.s32.f32 %v788_v58 }
  0xba   :  { %v796_v40 = vcvt.s32.f32 %v794_v6  ;;  %v802_v29 = vcvt.s32.f32 %v800_v33  ;;  %v812_v4 = vshrl.u32 %v789_v13, 16  ;;  %v816_v56 = vcvt.s32.f32 %v789_v13 }
  0xbb   :  { %v808_v41 = vcvt.s32.f32 %v806_v43  ;;  %v818_v51 = vshrl.u32 %v790_v15, 16  ;;  %v822_v2 = vcvt.s32.f32 %v790_v15  ;;  %v824_v49 = vshrl.u32 %v791_v45, 16 }
  0xbc   :  { %v797_v11 = vmul.f32 65536.0, %v796_v40  ;;  %v803_v57 = vmul.f32 65536.0, %v802_v29  ;;  %v814_v9 = vcvt.s32.f32 %v812_v4  ;;  %v828_v46 = vcvt.s32.f32 %v791_v45 }
  0xbd   :  { %v809_v19 = vmul.f32 65536.0, %v808_v41  ;;  %v820_v62 = vcvt.s32.f32 %v818_v51  ;;  %v826_v30 = vcvt.s32.f32 %v824_v49  ;;  %v830_v12 = vshrl.u32 %v792_v14, 16 }
  0xbe   :  { %v799_v48 = vadd.f32 %v798_v38, %v797_v11  ;;  %v805_v50 = vadd.f32 %v804_v10, %v803_v57  ;;  %v815_v44 = vmul.f32 65536.0, %v814_v9  ;;  %v834_v35 = vcvt.s32.f32 %v792_v14 }
  0xbf   :  { %v811_v18 = vadd.f32 %v810_v34, %v809_v19  ;;  %v821_v39 = vmul.f32 65536.0, %v820_v62  ;;  %v827_v0 = vmul.f32 65536.0, %v826_v30  ;;  %v832_v42 = vcvt.s32.f32 %v830_v12 }
  0xc0   :  { %v817_v8 = vadd.f32 %v816_v56, %v815_v44  ;;  %v836_v59 = vshrl.u32 %v793_v7, 16  ;;  %v840_v58 = vcvt.s32.f32 %v793_v7  ;;  %v842_v13 = vadd.f32 %v799_v48, %v743_v54 }
  0xc1   :  { %v823_v15 = vadd.f32 %v822_v2, %v821_v39  ;;  %v829_v6 = vadd.f32 %v828_v46, %v827_v0  ;;  %v833_v33 = vmul.f32 65536.0, %v832_v42  ;;  %v843_v45 = vadd.f32 %v805_v50, %v749_v47 }
  0xc2   :  { %v838_v43 = vcvt.s32.f32 %v836_v59  ;;  %v844_v40 = vadd.f32 %v811_v18, %v755_v60  ;;  %v845_v29 = vadd.f32 %v817_v8, %v761_v52  ;;  %v850_v4 = vmul.f32 1.5258789e-05, %v842_v13 }
  0xc3   :  { %v835_v38 = vadd.f32 %v834_v35, %v833_v33  ;;  %v846_v10 = vadd.f32 %v823_v15, %v767_v61  ;;  %v847_v41 = vadd.f32 %v829_v6, %v773_v36  ;;  %v851_v14 = vmul.f32 1.5258789e-05, %v843_v45 }
  0xc4   :  { %v785_v34 = vadd.f32 %v784_v5, %v783_v63  ;;  %v839_v51 = vmul.f32 65536.0, %v838_v43  ;;  %v852_v49 = vmul.f32 1.5258789e-05, %v844_v40  ;;  %v853_v11 = vmul.f32 1.5258789e-05, %v845_v29 }
  0xc5   :  { %v848_v56 = vadd.f32 %v835_v38, %v779_v3  ;;  %v854_v57 = vmul.f32 1.5258789e-05, %v846_v10  ;;  %v1726_v54 = vadd.f32 %v850_v4, %v1664_v31  ;;  %v866_v7 = vadd.s32 397355436, %v1442_v20 }
  0xc6   :  { %v841_v47 = vadd.f32 %v840_v58, %v839_v51  ;;  %v855_v2 = vmul.f32 1.5258789e-05, %v847_v41  ;;  %v1730_v60 = vadd.f32 %v851_v14, %v1667_v53  ;;  %v867_v52 = vadd.s32 397355436, %v1444_v21 }
  0xc7   :  { %v856_v61 = vmul.f32 1.5258789e-05, %v848_v56  ;;  %v1734_v5 = vadd.f32 %v852_v49, %v1673_v16  ;;  %v1737_v36 = vadd.f32 %v853_v11, %v1677_v37  ;;  %v868_v3 = vadd.s32 397355436, %v1446_v22 }
  0xc8   :  { %v849_v31 = vadd.f32 %v841_v47, %v785_v34  ;;  %v869_v63 = vadd.s32 397355436, %v1448_v23  ;;  %v870_v9 = vadd.s32 397355436, %v1450_v24  ;;  %v871_v46 = vadd.s32 397355436, %v1452_v25 }
  0xc9   :  { %v1744_v53 = vadd.f32 %v854_v57, %v1683_v32  ;;  %v872_v19 = vadd.s32 397355436, %v1454_v26  ;;  %v873_v16 = vadd.s32 397355436, %v1456_v27  ;;  %v874_v62 = vshrl.u32 %v866_v7, 16 }
  0xca   :  { %v857_v30 = vmul.f32 1.5258789e-05, %v849_v31  ;;  %v875_v37 = vshrl.u32 %v867_v52, 16  ;;  %v876_v12 = vshrl.u32 %v868_v3, 16  ;;  %v877_v48 = vshrl.u32 %v869_v63, 16 }
  0xcb   :  { %v878_v50 = vshrl.u32 %v870_v9, 16  ;;  %v879_v44 = vshrl.u32 %v871_v46, 16  ;;  %v880_v35 = vshrl.u32 %v872_v19, 16  ;;  %v881_v18 = vshrl.u32 %v873_v16, 16 }
  0xcc   :  { %v1749_v39 = vadd.f32 %v855_v2, %v1686_v55  ;;  %v882_v0 = vxor.u32 %v874_v62, %v866_v7  ;;  %v883_v42 = vxor.u32 %v875_v37, %v867_v52  ;;  %v884_v32 = vxor.u32 %v876_v12, %v868_v3 }
  0xcd   :  { %v885_v8 = vxor.u32 %v877_v48, %v869_v63  ;;  %v886_v59 = vxor.u32 %v878_v50, %v870_v9  ;;  %v887_v58 = vxor.u32 %v879_v44, %v871_v46  ;;  %v888_v13 = vxor.u32 %v880_v35, %v872_v19 }
  0xce   :  { %v1752_v15 = vadd.f32 %v856_v61, %v1688_v28  ;;  %v889_v6 = vxor.u32 %v881_v18, %v873_v16  ;;  %v890_v33 = vmul.u32 2146121005, %v882_v0  ;;  %v891_v45 = vmul.u32 2146121005, %v883_v42 }
  0xcf   :  { %v1755_v43 = vadd.f32 %v857_v30, %v1712_v17  ;;  %v892_v40 = vmul.u32 2146121005, %v884_v32  ;;  %v893_v29 = vmul.u32 2146121005, %v885_v8  ;;  %v1758_v55 = vadd.s32 2644177943, %v1442_v20 }
  0xd0   :  { %v894_v4 = vmul.u32 2146121005, %v886_v59  ;;  %v895_v38 = vmul.u32 2146121005, %v887_v58  ;;  %v898_v10 = vshrl.u32 %v890_v33, 15  ;;  %v899_v41 = vshrl.u32 %v891_v45, 15 }
  0xd1   :  { %v896_v14 = vmul.u32 2146121005, %v888_v13  ;;  %v897_v34 = vmul.u32 2146121005, %v889_v6  ;;  %v900_v51 = vshrl.u32 %v892_v40, 15  ;;  %v901_v28 = vshrl.u32 %v893_v29, 15 }
  0xd2   :  { %v902_v49 = vshrl.u32 %v894_v4, 15  ;;  %v903_v11 = vshrl.u32 %v895_v38, 15  ;;  %v906_v56 = vxor.u32 %v898_v10, %v890_v33  ;;  %v907_v57 = vxor.u32 %v899_v41, %v891_v45 }
  0xd3   :  { %v904_v7 = vshrl.u32 %v896_v14, 15  ;;  %v905_v17 = vshrl.u32 %v897_v34, 15  ;;  %v908_v47 = vxor.u32 %v900_v51, %v892_v40  ;;  %v909_v2 = vxor.u32 %v901_v28, %v893_v29 }
  0xd4   :  { %v910_v52 = vxor.u32 %v902_v49, %v894_v4  ;;  %v911_v61 = vxor.u32 %v903_v11, %v895_v38  ;;  %v914_v20 = vmul.u32 2221713035, %v906_v56  ;;  %v915_v3 = vmul.u32 2221713035, %v907_v57 }
  0xd5   :  { %v912_v31 = vxor.u32 %v904_v7, %v896_v14  ;;  %v913_v63 = vxor.u32 %v905_v17, %v897_v34  ;;  %v916_v9 = vmul.u32 2221713035, %v908_v47  ;;  %v917_v46 = vmul.u32 2221713035, %v909_v2 }
  0xd6   :  { %v918_v19 = vmul.u32 2221713035, %v910_v52  ;;  %v919_v16 = vmul.u32 2221713035, %v911_v61  ;;  %v922_v62 = vshrl.u32 %v914_v20, 16  ;;  %v923_v30 = vshrl.u32 %v915_v3, 16 }
  0xd7   :  { %v920_v37 = vmul.u32 2221713035, %v912_v31  ;;  %v921_v12 = vmul.u32 2221713035, %v913_v63  ;;  %v924_v48 = vshrl.u32 %v916_v9, 16  ;;  %v925_v50 = vshrl.u32 %v917_v46, 16 }
  0xd8   :  { %v926_v44 = vshrl.u32 %v918_v19, 16  ;;  %v927_v35 = vshrl.u32 %v919_v16, 16  ;;  %v1760_v18 = vxor.u32 %v922_v62, %v914_v20  ;;  %v1762_v0 = vxor.u32 %v923_v30, %v915_v3 }
  0xd9   :  { %v928_v42 = vshrl.u32 %v920_v37, 16  ;;  %v929_v32 = vshrl.u32 %v921_v12, 16  ;;  %v1764_v8 = vxor.u32 %v924_v48, %v916_v9  ;;  %v1766_v59 = vxor.u32 %v925_v50, %v917_v46 }
  0xda   :  { %v1768_v58 = vxor.u32 %v926_v44, %v918_v19  ;;  %v1770_v13 = vxor.u32 %v927_v35, %v919_v16  ;;  %v938_v6 = vand.u32 65535, %v1760_v18  ;;  %v939_v33 = vand.u32 65535, %v1762_v0 }
  0xdb   :  { %v1774_v45 = vxor.u32 %v928_v42, %v920_v37  ;;  %v1776_v40 = vxor.u32 %v929_v32, %v921_v12  ;;  %v940_v29 = vand.u32 65535, %v1764_v8  ;;  %v941_v4 = vand.u32 65535, %v1766_v59 }
  0xdc   :  { %v942_v38 = vand.u32 65535, %v1768_v58  ;;  %v943_v10 = vand.u32 65535, %v1770_v13  ;;  %v946_v41 = vshrl.u32 %v938_v6, 16  ;;  %v950_v14 = vcvt.s32.f32 %v938_v6 }
  0xdd   :  { %v944_v34 = vand.u32 65535, %v1774_v45  ;;  %v945_v51 = vand.u32 65535, %v1776_v40  ;;  %v952_v28 = vshrl.u32 %v939_v33, 16  ;;  %v956_v49 = vcvt.s32.f32 %v939_v33 }
  0xde   :  { %v948_v11 = vcvt.s32.f32 %v946_v41  ;;  %v958_v56 = vshrl.u32 %v940_v29, 16  ;;  %v962_v57 = vcvt.s32.f32 %v940_v29  ;;  %v964_v7 = vshrl.u32 %v941_v4, 16 }
  0xdf   :  { %v954_v17 = vcvt.s32.f32 %v952_v28  ;;  %v968_v47 = vcvt.s32.f32 %v941_v4  ;;  %v970_v2 = vshrl.u32 %v942_v38, 16  ;;  %v974_v52 = vcvt.s32.f32 %v942_v38 }
  0xe0   :  { %v949_v61 = vmul.f32 65536.0, %v948_v11  ;;  %v960_v20 = vcvt.s32.f32 %v958_v56  ;;  %v966_v3 = vcvt.s32.f32 %v964_v7  ;;  %v976_v31 = vshrl.u32 %v943_v10, 16 }
  0xe1   :  { %v955_v63 = vmul.f32 65536.0, %v954_v17  ;;  %v972_v9 = vcvt.s32.f32 %v970_v2  ;;  %v980_v46 = vcvt.s32.f32 %v943_v10  ;;  %v982_v19 = vshrl.u32 %v944_v34, 16 }
  0xe2   :  { %v951_v16 = vadd.f32 %v950_v14, %v949_v61  ;;  %v961_v62 = vmul.f32 65536.0, %v960_v20  ;;  %v967_v30 = vmul.f32 65536.0, %v966_v3  ;;  %v978_v37 = vcvt.s32.f32 %v976_v31 }
  0xe3   :  { %v957_v12 = vadd.f32 %v956_v49, %v955_v63  ;;  %v973_v48 = vmul.f32 65536.0, %v972_v9  ;;  %v984_v50 = vcvt.s32.f32 %v982_v19  ;;  %v986_v44 = vcvt.s32.f32 %v944_v34 }
  0xe4   :  { %v963_v35 = vadd.f32 %v962_v57, %v961_v62  ;;  %v969_v42 = vadd.f32 %v968_v47, %v967_v30  ;;  %v979_v32 = vmul.f32 65536.0, %v978_v37  ;;  %v988_v6 = vshrl.u32 %v945_v51, 16 }
  0xe5   :  { %v975_v33 = vadd.f32 %v974_v52, %v973_v48  ;;  %v985_v29 = vmul.f32 65536.0, %v984_v50  ;;  %v992_v4 = vcvt.s32.f32 %v945_v51  ;;  %v994_v38 = vshrl.u32 %v1760_v18, 16 }
  0xe6   :  { %v981_v41 = vadd.f32 %v980_v46, %v979_v32  ;;  %v990_v10 = vcvt.s32.f32 %v988_v6  ;;  %v995_v14 = vshrl.u32 %v1762_v0, 16  ;;  %v996_v28 = vshrl.u32 %v1764_v8, 16 }
  0xe7   :  { %v987_v11 = vadd.f32 %v986_v44, %v985_v29  ;;  %v997_v49 = vshrl.u32 %v1766_v59, 16  ;;  %v998_v34 = vshrl.u32 %v1768_v58, 16  ;;  %v999_v56 = vshrl.u32 %v1770_v13, 16 }
  0xe8   :  { %v991_v57 = vmul.f32 65536.0, %v990_v10  ;;  %v1000_v7 = vshrl.u32 %v1774_v45, 16  ;;  %v1001_v51 = vshrl.u32 %v1776_v40, 16  ;;  %v1002_v17 = vshrl.u32 %v994_v38, 16 }
  0xe9   :  { %v1006_v18 = vcvt.s32.f32 %v994_v38  ;;  %v1008_v47 = vshrl.u32 %v995_v14, 16  ;;  %v1012_v2 = vcvt.s32.f32 %v995_v14  ;;  %v1014_v52 = vshrl.u32 %v996_v28, 16 }
  0xea   :  { %v993_v0 = vadd.f32 %v992_v4, %v991_v57  ;;  %v1004_v61 = vcvt.s32.f32 %v1002_v17  ;;  %v1018_v8 = vcvt.s32.f32 %v996_v28  ;;  %v1020_v20 = vshrl.u32 %v997_v49, 16 }
  0xeb   :  { %v1010_v3 = vcvt.s32.f32 %v1008_v47  ;;  %v1016_v59 = vcvt.s32.f32 %v1014_v52  ;;  %v1024_v31 = vcvt.s32.f32 %v997_v49  ;;  %v1026_v58 = vshrl.u32 %v998_v34, 16 }
  0xec   :  { %v1005_v63 = vmul.f32 65536.0, %v1004_v61  ;;  %v1022_v13 = vcvt.s32.f32 %v1020_v20  ;;  %v1030_v9 = vcvt.s32.f32 %v998_v34  ;;  %v1032_v46 = vshrl.u32 %v999_v56, 16 }
  0xed   :  { %v1011_v45 = vmul.f32 65536.0, %v1010_v3  ;;  %v1017_v19 = vmul.f32 65536.0, %v1016_v59  ;;  %v1028_v40 = vcvt.s32.f32 %v1026_v58  ;;  %v1036_v62 = vcvt.s32.f32 %v999_v56 }
  0xee   :  { %v1007_v30 = vadd.f32 %v1006_v18, %v1005_v63  ;;  %v1023_v37 = vmul.f32 65536.0, %v1022_v13  ;;  %v1034_v48 = vcvt.s32.f32 %v1032_v46  ;;  %v1038_v50 = vshrl.u32 %v1000_v7, 16 }
  0xef   :  { %v1013_v44 = vadd.f32 %v1012_v2, %v1011_v45  ;;  %v1019_v32 = vadd.f32 %v1018_v8, %v1017_v19  ;;  %v1029_v6 = vmul.f32 65536.0, %v1028_v40  ;;  %v1042_v29 = vcvt.s32.f32 %v1000_v7 }
  0xf0   :  { %v1025_v4 = vadd.f32 %v1024_v31, %v1023_v37  ;;  %v1035_v38 = vmul.f32 65536.0, %v1034_v48  ;;  %v1040_v10 = vcvt.s32.f32 %v1038_v50  ;;  %v1044_v14 = vshrl.u32 %v1001_v51, 16 }
  0xf1   :  { %v1031_v28 = vadd.f32 %v1030_v9, %v1029_v6  ;;  %v1048_v49 = vcvt.s32.f32 %v1001_v51  ;;  %v1050_v34 = vadd.f32 %v1007_v30, %v951_v16  ;;  %v1051_v57 = vadd.f32 %v1013_v44, %v957_v12 }
  0xf2   :  { %v1037_v17 = vadd.f32 %v1036_v62, %v1035_v38  ;;  %v1041_v47 = vmul.f32 65536.0, %v1040_v10  ;;  %v1046_v52 = vcvt.s32.f32 %v1044_v14  ;;  %v1052_v56 = vadd.f32 %v1019_v32, %v963_v35 }
  0xf3   :  { %v1053_v18 = vadd.f32 %v1025_v4, %v969_v42  ;;  %v1054_v61 = vadd.f32 %v1031_v28, %v975_v33  ;;  %v1058_v20 = vmul.f32 1.5258789e-05, %v1050_v34  ;;  %v1059_v3 = vmul.f32 1.5258789e-05, %v1051_v57 }
  0xf4   :  { %v1043_v2 = vadd.f32 %v1042_v29, %v1041_v47  ;;  %v1047_v8 = vmul.f32 65536.0, %v1046_v52  ;;  %v1055_v59 = vadd.f32 %v1037_v17, %v981_v41  ;;  %v1060_v7 = vmul.f32 1.5258789e-05, %v1052_v56 }
  0xf5   :  { %v1061_v31 = vmul.f32 1.5258789e-05, %v1053_v18  ;;  %v1062_v58 = vmul.f32 1.5258789e-05, %v1054_v61  ;;  %v1075_v63 = vadd.s32 2644177943, %v1444_v21  ;;  %v1796_v16 = vstv %s1901_s1 }
  0xf6   :  { %v1049_v12 = vadd.f32 %v1048_v49, %v1047_v8  ;;  %v1056_v51 = vadd.f32 %v1043_v2, %v987_v11  ;;  %v1063_v35 = vmul.f32 1.5258789e-05, %v1055_v59  ;;  %v1799_v42 = vadd.f32 %v1058_v20, %v1726_v54 }
  0xf7   :  { %v1802_v33 = vadd.f32 %v1059_v3, %v1730_v60  ;;  %v1805_v41 = vadd.f32 %v1060_v7, %v1734_v5  ;;  %v1076_v13 = vadd.s32 2644177943, %v1446_v22  ;;  %v1077_v21 = vadd.s32 2644177943, %v1448_v23 }
  0xf8   :  { %v1057_v9 = vadd.f32 %v1049_v12, %v993_v0  ;;  %v1064_v46 = vmul.f32 1.5258789e-05, %v1056_v51  ;;  %v1810_v45 = vadd.f32 %v1061_v31, %v1737_v36  ;;  %v1078_v11 = vadd.s32 2644177943, %v1450_v24 }
  0xf9   :  { %v1814_v54 = vadd.f32 %v1062_v58, %v1744_v53  ;;  %v1079_v60 = vadd.s32 2644177943, %v1452_v25  ;;  %v1080_v19 = vadd.s32 2644177943, %v1454_v26  ;;  %v1081_v5 = vadd.s32 2644177943, %v1456_v27 }
  0xfa   :  { %v1065_v40 = vmul.f32 1.5258789e-05, %v1057_v9  ;;  %v1820_v22 = vadd.f32 %v1063_v35, %v1749_v39  ;;  %v1082_v23 = vshrl.u32 %v1758_v55, 16  ;;  %v1083_v0 = vshrl.u32 %v1075_v63, 16 }
  0xfb   :  { %v1084_v36 = vshrl.u32 %v1076_v13, 16  ;;  %v1085_v62 = vshrl.u32 %v1077_v21, 16  ;;  %v1086_v30 = vshrl.u32 %v1078_v11, 16  ;;  %v1087_v24 = vshrl.u32 %v1079_v60, 16 }
  0xfc   :  { %v1824_v53 = vadd.f32 %v1064_v46, %v1752_v15  ;;  %v1088_v37 = vshrl.u32 %v1080_v19, 16  ;;  %v1089_v25 = vshrl.u32 %v1081_v5, 16  ;;  %v1090_v26 = vxor.u32 %v1082_v23, %v1758_v55 }
  0xfd   :  { %v1091_v48 = vxor.u32 %v1083_v0, %v1075_v63  ;;  %v1092_v27 = vxor.u32 %v1084_v36, %v1076_v13  ;;  %v1093_v50 = vxor.u32 %v1085_v62, %v1077_v21  ;;  %v1094_v44 = vxor.u32 %v1086_v30, %v1078_v11 }
  0xfe   :  { %v1095_v39 = vxor.u32 %v1087_v24, %v1079_v60  ;;  %v1096_v32 = vxor.u32 %v1088_v37, %v1080_v19  ;;  %v1097_v6 = vxor.u32 %v1089_v25, %v1081_v5  ;;  %v1098_v29 = vmul.u32 2146121005, %v1090_v26 }
  0xff   :  { %v1828_v4 = vadd.f32 %v1065_v40, %v1755_v43  ;;  %v1099_v38 = vmul.u32 2146121005, %v1091_v48  ;;  %v1100_v10 = vmul.u32 2146121005, %v1092_v27  ;;  %v1415_v49 = vmov 1983009808  }
 0x100   :  { %v1101_v14 = vmul.u32 2146121005, %v1093_v50  ;;  %v1102_v15 = vmul.u32 2146121005, %v1094_v44  ;;  %v1106_v28 = vshrl.u32 %v1098_v29, 15  ;;  %v1830_v34 = vunpack.c.l.s4 %v1415_v49 }
 0x101   :  { %v1103_v55 = vmul.u32 2146121005, %v1095_v39  ;;  %v1104_v57 = vmul.u32 2146121005, %v1096_v32  ;;  %v1107_v17 = vshrl.u32 %v1099_v38, 15  ;;  %v1108_v47 = vshrl.u32 %v1100_v10, 15 }
 0x102   :  { %v1105_v52 = vmul.u32 2146121005, %v1097_v6  ;;  %v1109_v56 = vshrl.u32 %v1101_v14, 15  ;;  %v1110_v18 = vshrl.u32 %v1102_v15, 15  ;;  %v1114_v61 = vxor.u32 %v1106_v28, %v1098_v29 }
 0x103   :  { %v1111_v20 = vshrl.u32 %v1103_v55, 15  ;;  %v1112_v3 = vshrl.u32 %v1104_v57, 15  ;;  %v1115_v43 = vxor.u32 %v1107_v17, %v1099_v38  ;;  %v1116_v2 = vxor.u32 %v1108_v47, %v1100_v10 }
 0x104   :  { %v1113_v8 = vshrl.u32 %v1105_v52, 15  ;;  %v1117_v59 = vxor.u32 %v1109_v56, %v1101_v14  ;;  %v1118_v7 = vxor.u32 %v1110_v18, %v1102_v15  ;;  %v1122_v31 = vmul.u32 2221713035, %v1114_v61 }
 0x105   :  { %v1119_v58 = vxor.u32 %v1111_v20, %v1103_v55  ;;  %v1120_v63 = vxor.u32 %v1112_v3, %v1104_v57  ;;  %v1123_v12 = vmul.u32 2221713035, %v1115_v43  ;;  %v1124_v51 = vmul.u32 2221713035, %v1116_v2 }
 0x106   :  { %v1121_v35 = vxor.u32 %v1113_v8, %v1105_v52  ;;  %v1125_v13 = vmul.u32 2221713035, %v1117_v59  ;;  %v1126_v21 = vmul.u32 2221713035, %v1118_v7  ;;  %v1130_v9 = vshrl.u32 %v1122_v31, 16 }
 0x107   :  { %v1127_v46 = vmul.u32 2221713035, %v1119_v58  ;;  %v1128_v11 = vmul.u32 2221713035, %v1120_v63  ;;  %v1131_v60 = vshrl.u32 %v1123_v12, 16  ;;  %v1132_v19 = vshrl.u32 %v1124_v51, 16 }
 0x108   :  { %v1129_v5 = vmul.u32 2221713035, %v1121_v35  ;;  %v1133_v40 = vshrl.u32 %v1125_v13, 16  ;;  %v1134_v23 = vshrl.u32 %v1126_v21, 16  ;;  %v1832_v0 = vxor.u32 %v1130_v9, %v1122_v31 }
 0x109   :  { %v1135_v36 = vshrl.u32 %v1127_v46, 16  ;;  %v1136_v62 = vshrl.u32 %v1128_v11, 16  ;;  %v1834_v30 = vxor.u32 %v1131_v60, %v1123_v12  ;;  %v1836_v24 = vxor.u32 %v1132_v19, %v1124_v51 }
 0x10a   :  { %v1137_v37 = vshrl.u32 %v1129_v5, 16  ;;  %v1838_v25 = vxor.u32 %v1133_v40, %v1125_v13  ;;  %v1840_v26 = vxor.u32 %v1134_v23, %v1126_v21  ;;  %v1146_v48 = vand.u32 65535, %v1832_v0 }
 0x10b   :  { %v1843_v27 = vxor.u32 %v1135_v36, %v1127_v46  ;;  %v1845_v50 = vxor.u32 %v1136_v62, %v1128_v11  ;;  %v1147_v44 = vand.u32 65535, %v1834_v30  ;;  %v1148_v39 = vand.u32 65535, %v1836_v24 }
 0x10c   :  { %v1849_v32 = vxor.u32 %v1137_v37, %v1129_v5  ;;  %v1149_v6 = vand.u32 65535, %v1838_v25  ;;  %v1150_v29 = vand.u32 65535, %v1840_v26  ;;  %v1154_v38 = vshrl.u32 %v1146_v48, 16 }
 0x10d   :  { %v1151_v10 = vand.u32 65535, %v1843_v27  ;;  %v1152_v14 = vand.u32 65535, %v1845_v50  ;;  %v1158_v15 = vcvt.s32.f32 %v1146_v48  ;;  %v1160_v28 = vshrl.u32 %v1147_v44, 16 }
 0x10e   :  { %v1153_v49 = vand.u32 65535, %v1849_v32  ;;  %v1156_v55 = vcvt.s32.f32 %v1154_v38  ;;  %v1164_v57 = vcvt.s32.f32 %v1147_v44  ;;  %v1166_v17 = vshrl.u32 %v1148_v39, 16 }
 0x10f   :  { %v1162_v47 = vcvt.s32.f32 %v1160_v28  ;;  %v1170_v52 = vcvt.s32.f32 %v1148_v39  ;;  %v1172_v56 = vshrl.u32 %v1149_v6, 16  ;;  %v1176_v18 = vcvt.s32.f32 %v1149_v6 }
 0x110   :  { %v1157_v61 = vmul.f32 65536.0, %v1156_v55  ;;  %v1168_v20 = vcvt.s32.f32 %v1166_v17  ;;  %v1178_v3 = vshrl.u32 %v1150_v29, 16  ;;  %v1182_v43 = vcvt.s32.f32 %v1150_v29 }
 0x111   :  { %v1163_v2 = vmul.f32 65536.0, %v1162_v47  ;;  %v1174_v8 = vcvt.s32.f32 %v1172_v56  ;;  %v1184_v59 = vshrl.u32 %v1151_v10, 16  ;;  %v1188_v7 = vcvt.s32.f32 %v1151_v10 }
 0x112   :  { %v1856_v31 = vadd.f32 %v1158_v15, %v1157_v61  ;;  %v1169_v58 = vmul.f32 65536.0, %v1168_v20  ;;  %v1180_v63 = vcvt.s32.f32 %v1178_v3  ;;  %v1190_v12 = vshrl.u32 %v1152_v14, 16 }
 0x113   :  { %v1858_v51 = vadd.f32 %v1164_v57, %v1163_v2  ;;  %v1175_v35 = vmul.f32 65536.0, %v1174_v8  ;;  %v1186_v13 = vcvt.s32.f32 %v1184_v59  ;;  %v1194_v21 = vcvt.s32.f32 %v1152_v14 }
 0x114   :  { %v1171_v9 = vadd.f32 %v1170_v52, %v1169_v58  ;;  %v1181_v46 = vmul.f32 65536.0, %v1180_v63  ;;  %v1192_v11 = vcvt.s32.f32 %v1190_v12  ;;  %v1196_v60 = vshrl.u32 %v1153_v49, 16 }
 0x115   :  { %v1177_v19 = vadd.f32 %v1176_v18, %v1175_v35  ;;  %v1187_v5 = vmul.f32 65536.0, %v1186_v13  ;;  %v1200_v40 = vcvt.s32.f32 %v1153_v49  ;;  %v1202_v23 = vshrl.u32 %v1832_v0, 16 }
 0x116   :  { %v1183_v36 = vadd.f32 %v1182_v43, %v1181_v46  ;;  %v1193_v62 = vmul.f32 65536.0, %v1192_v11  ;;  %v1198_v37 = vcvt.s32.f32 %v1196_v60  ;;  %v1203_v48 = vshrl.u32 %v1834_v30, 16 }
 0x117   :  { %v1189_v44 = vadd.f32 %v1188_v7, %v1187_v5  ;;  %v1204_v39 = vshrl.u32 %v1836_v24, 16  ;;  %v1205_v6 = vshrl.u32 %v1838_v25, 16  ;;  %v1206_v29 = vshrl.u32 %v1840_v26, 16 }
 0x118   :  { %v1195_v38 = vadd.f32 %v1194_v21, %v1193_v62  ;;  %v1199_v10 = vmul.f32 65536.0, %v1198_v37  ;;  %v1207_v14 = vshrl.u32 %v1843_v27, 16  ;;  %v1208_v15 = vshrl.u32 %v1845_v50, 16 }
 0x119   :  { %v1209_v0 = vshrl.u32 %v1849_v32, 16  ;;  %v1210_v28 = vshrl.u32 %v1202_v23, 16  ;;  %v1214_v49 = vcvt.s32.f32 %v1202_v23  ;;  %v1216_v55 = vshrl.u32 %v1203_v48, 16 }
 0x11a   :  { %v1201_v57 = vadd.f32 %v1200_v40, %v1199_v10  ;;  %v1220_v30 = vcvt.s32.f32 %v1203_v48  ;;  %v1222_v17 = vshrl.u32 %v1204_v39, 16  ;;  %v1226_v47 = vcvt.s32.f32 %v1204_v39 }
 0x11b   :  { %v1212_v24 = vcvt.s32.f32 %v1210_v28  ;;  %v1218_v52 = vcvt.s32.f32 %v1216_v55  ;;  %v1228_v25 = vshrl.u32 %v1205_v6, 16  ;;  %v1232_v56 = vcvt.s32.f32 %v1205_v6 }
 0x11c   :  { %v1224_v26 = vcvt.s32.f32 %v1222_v17  ;;  %v1234_v18 = vshrl.u32 %v1206_v29, 16  ;;  %v1238_v61 = vcvt.s32.f32 %v1206_v29  ;;  %v1240_v20 = vshrl.u32 %v1207_v14, 16 }
 0x11d   :  { %v1213_v27 = vmul.f32 65536.0, %v1212_v24  ;;  %v1219_v3 = vmul.f32 65536.0, %v1218_v52  ;;  %v1230_v50 = vcvt.s32.f32 %v1228_v25  ;;  %v1244_v43 = vcvt.s32.f32 %v1207_v14 }
 0x11e   :  { %v1225_v32 = vmul.f32 65536.0, %v1224_v26  ;;  %v1236_v2 = vcvt.s32.f32 %v1234_v18  ;;  %v1242_v8 = vcvt.s32.f32 %v1240_v20  ;;  %v1246_v59 = vshrl.u32 %v1208_v15, 16 }
 0x11f   :  { %v1215_v7 = vadd.f32 %v1214_v49, %v1213_v27  ;;  %v1221_v58 = vadd.f32 %v1220_v30, %v1219_v3  ;;  %v1231_v63 = vmul.f32 65536.0, %v1230_v50  ;;  %v1250_v12 = vcvt.s32.f32 %v1208_v15 }
 0x120   :  { %v1227_v35 = vadd.f32 %v1226_v47, %v1225_v32  ;;  %v1237_v13 = vmul.f32 65536.0, %v1236_v2  ;;  %v1243_v21 = vmul.f32 65536.0, %v1242_v8  ;;  %v1248_v46 = vcvt.s32.f32 %v1246_v59 }
 0x121   :  { %v1233_v11 = vadd.f32 %v1232_v56, %v1231_v63  ;;  %v1252_v60 = vshrl.u32 %v1209_v0, 16  ;;  %v1256_v5 = vcvt.s32.f32 %v1209_v0  ;;  %v1258_v40 = vadd.f32 %v1215_v7, %v1856_v31 }
 0x122   :  { %v1239_v23 = vadd.f32 %v1238_v61, %v1237_v13  ;;  %v1245_v62 = vadd.f32 %v1244_v43, %v1243_v21  ;;  %v1249_v37 = vmul.f32 65536.0, %v1248_v46  ;;  %v1259_v48 = vadd.f32 %v1221_v58, %v1858_v51 }
 0x123   :  { %v1254_v39 = vcvt.s32.f32 %v1252_v60  ;;  %v1260_v6 = vadd.f32 %v1227_v35, %v1171_v9  ;;  %v1261_v29 = vadd.f32 %v1233_v11, %v1177_v19  ;;  %v1266_v10 = vmul.f32 1.5258789e-05, %v1258_v40 }
 0x124   :  { %v1251_v14 = vadd.f32 %v1250_v12, %v1249_v37  ;;  %v1262_v15 = vadd.f32 %v1239_v23, %v1183_v36  ;;  %v1263_v28 = vadd.f32 %v1245_v62, %v1189_v44  ;;  %v1267_v49 = vmul.f32 1.5258789e-05, %v1259_v48 }
 0x125   :  { %v1255_v55 = vmul.f32 65536.0, %v1254_v39  ;;  %v1268_v30 = vmul.f32 1.5258789e-05, %v1260_v6  ;;  %v1269_v17 = vmul.f32 1.5258789e-05, %v1261_v29  ;;  %v1274_v0 = vadd.f32 %v1266_v10, %v1799_v42 }
 0x126   :  { %v1264_v47 = vadd.f32 %v1251_v14, %v1195_v38  ;;  %v1270_v31 = vmul.f32 1.5258789e-05, %v1262_v15  ;;  %v1271_v24 = vmul.f32 1.5258789e-05, %v1263_v28  ;;  %v1275_v52 = vadd.f32 %v1267_v49, %v1802_v33 }
 0x127   :  { %v1257_v25 = vadd.f32 %v1256_v5, %v1255_v55  ;;  %v1276_v51 = vadd.f32 %v1268_v30, %v1805_v41  ;;  %v1277_v9 = vadd.f32 %v1269_v17, %v1810_v45  ;;  %v1406_v19 = vadd.f32 -6.0, %v1274_v0 }
 0x128   :  { %v1272_v56 = vmul.f32 1.5258789e-05, %v1264_v47  ;;  %v1278_v36 = vadd.f32 %v1270_v31, %v1814_v54  ;;  %v1279_v44 = vadd.f32 %v1271_v24, %v1820_v22  ;;  %v1407_v26 = vadd.f32 -6.0, %v1275_v52 }
 0x129   :  { %v1265_v18 = vadd.f32 %v1257_v25, %v1201_v57  ;;  %v1408_v61 = vadd.f32 -6.0, %v1276_v51  ;;  %v1409_v42 = vadd.f32 -6.0, %v1277_v9  ;;  %v1294_v38 = vmul.f32 %v1406_v19, %v1796_v16 }
 0x12a   :  { %v1280_v20 = vadd.f32 %v1272_v56, %v1824_v53  ;;  %v1410_v33 = vadd.f32 -6.0, %v1278_v36  ;;  %v1411_v27 = vadd.f32 -6.0, %v1279_v44  ;;  %v1295_v41 = vmul.f32 %v1407_v26, %v1796_v16 }
 0x12b   :  { %v1273_v3 = vmul.f32 1.5258789e-05, %v1265_v18  ;;  %v1296_v45 = vmul.f32 %v1408_v61, %v1796_v16  ;;  %v1297_v50 = vmul.f32 %v1409_v42, %v1796_v16  ;;  %v1314_v54 = vunpack.c.0.s8 %v1830_v34  ;;  %v1290_v34 = vld [vmem:[%s1902_s2] sm:$0xff] }
 0x12c   :  { %v1412_v22 = vadd.f32 -6.0, %v1280_v20  ;;  %v1298_v57 = vmul.f32 %v1410_v33, %v1796_v16  ;;  %v1299_v43 = vmul.f32 %v1411_v27, %v1796_v16  ;;  %v1310_v32 = vcombine.low %v1294_v38, %v1295_v41 }
 0x12d   :  { %v1281_v2 = vadd.f32 %v1273_v3, %v1828_v4  ;;  %v1311_v53 = vcombine.low %v1296_v45, %v1297_v50  ;;  %v1317_v8 = vsub.s32 %v1314_v54, %v1436_v1  ;;  %v1291_v1 = vld [vmem:[%s1902_s2 + $0x8] sm:$0xff] }
 0x12e   :  { %v1300_v59 = vmul.f32 %v1412_v22, %v1796_v16  ;;  %v1327_v12 = vcombine.low %v1298_v57, %v1299_v43 }
 0x12f   :  { %v1413_v7 = vadd.f32 -6.0, %v1281_v2  ;;  %v1318_v58 = vrot.slane %v1310_v32, %v1317_v8  ;;  %v1325_v63 = vrot.slane %v1311_v53, %v1317_v8 }
 0x130   :  { %v1335_v46 = vrot.slane %v1327_v12, %v1317_v8 }
 0x131   :  { %v1301_v35 = vmul.f32 %v1413_v7, %v1796_v16  ;;  %v1326_v13 = vcombine.low %v1318_v58, %v1325_v63 }
 0x133   :  { %v1328_v21 = vcombine.low %v1300_v59, %v1301_v35  ;;  %v1346_v11 = vadd.f32 %v1326_v13, %v1290_v34 }
 0x135   :  { %v1342_v4 = vrot.slane %v1328_v21, %v1317_v8  ;;  %v1348_v60 = vmax.f32 %v1346_v11, 0.0 }
 0x137   :  { %v1343_v5 = vcombine.low %v1335_v46, %v1342_v4  ;;  %v1350_v40 = vmin.f32 %v1348_v60, 1.0 }
 0x139   :  { %v1347_v23 = vadd.f32 %v1343_v5, %v1291_v1  ;;  %1352 = vst [vmem:[%s1903_s3] sm:$0xff] %v1350_v40 }
 0x13b   :  { %v1349_v62 = vmax.f32 %v1347_v23, 0.0 }
 0x13d   :  { %v1351_v37 = vmin.f32 %v1349_v62, 1.0 }
 0x13f   :  { %1353 = vst [vmem:[%s1903_s3 + $0x8] sm:$0xff] %v1351_v37 }

</bundles_post_ra>
